<compile_context>
chip_gen: v6e
topology: v6e:2x2x1
jax: 0.10.0
libtpu: 0.0.40
codegen_flags: <defaults>
</compile_context>

<pallas_src>
import functools
import math

import jax
import jax.numpy as jnp
from jax.experimental import pallas as pl
from jax.experimental.pallas import tpu as pltpu


def _sparse_attention_kernel(qk_ref, v_ref, wqkT_ref, bqk_ref,
                             w_out_ref, o_ref, *, batch, num_heads,
                             sparsity_threshold):
    B = batch
    _, L, E = v_ref.shape
    BL = B * L
    head_dim = E // num_heads
    scale = 1.0 / math.sqrt(head_dim)

    # Single fused in-projection for q and k of ALL batches:
    #   rows [0, BL)    = q inputs  -> use wq columns [:E]
    #   rows [BL, 2*BL) = k inputs  -> use wk columns [E:]
    # Weights were pre-transposed + concatenated host-side, so this is one
    # (2*B*L, E) x (E, 2E) MXU matmul with no in-kernel transpose.
    proj = jnp.dot(qk_ref[...], wqkT_ref[...],
                   preferred_element_type=jnp.float32) + bqk_ref[...]
    qp = proj[:BL, :E] * scale            # (B*L, E)  q projection, pre-scaled
    kp = proj[BL:, E:]                    # (B*L, E)  k projection

    qp3 = qp.reshape(B, L, E)
    kp3 = kp.reshape(B, L, E)

    # Per-head softmax(q k^T) batched over B, averaged over heads
    # (nn.MultiheadAttention default average_attn_weights=True).  Heads stay a
    # short unrolled loop; each score matmul is one batched contraction.
    # TODO(synk): for large E one would cast MXU operands to bf16 (keeping f32
    # accumulation) on v6e/v7x; skipped here to preserve 1e-5 parity.
    w_avg = jnp.zeros((B, L, L), jnp.float32)
    for h in range(num_heads):
        qh = qp3[:, :, h * head_dim:(h + 1) * head_dim]   # (B, L, hd)
        kh = kp3[:, :, h * head_dim:(h + 1) * head_dim]   # (B, L, hd)
        s = jnp.einsum('bqd,bkd->bqk', qh, kh,
                       preferred_element_type=jnp.float32)
        s = s - jnp.max(s, axis=-1, keepdims=True)
        e = jnp.exp(s)
        w_avg = w_avg + e * pl.reciprocal(
            jnp.sum(e, axis=-1, keepdims=True), approx=False)
    w_avg = w_avg * (1.0 / num_heads)                     # (B, L, L)

    # Sparsify + renormalize.  Rows whose weights all fall below the threshold
    # stay ~0 because of the +1e-6 denominator — this mirrors the PyTorch
    # module exactly, so it is kept.
    sw = jnp.where(w_avg > sparsity_threshold, w_avg, 0.0)
    sw = sw * pl.reciprocal(jnp.sum(sw, axis=-1, keepdims=True) + 1e-6,
                            approx=False)

    w_out_ref[...] = sw
    o_ref[...] = jnp.einsum('bqk,bke->bqe', sw, v_ref[...],
                            preferred_element_type=jnp.float32)


def sparse_attention_pallas(q4, k4, v4, params, num_heads,
                            sparsity_threshold=0.1):
    B, C, H, W = q4.shape
    L, E = H * W, C

    to_ble = lambda x: x.reshape(B, C, L).transpose(0, 2, 1)   # (B, L, E)
    qb, kb, vb = to_ble(q4), to_ble(k4), to_ble(v4)

    # Fold batch into the matmul M-dimension and stack q/k along M so the
    # kernel performs a single in-projection matmul (M = 2*B*L).
    qk2d = jnp.concatenate(
        [qb.reshape(B * L, E), kb.reshape(B * L, E)], axis=0)   # (2*B*L, E)

    # Host-side pre-transpose + concatenation of the projection weights: no
    # per-invocation XLU transpose inside the kernel.
    wqkT = jnp.concatenate([params["wq"], params["wk"]], axis=0).T  # (E, 2E)
    bqk = jnp.concatenate([params["bq"], params["bk"]], axis=1)     # (1, 2E)

    kernel = functools.partial(_sparse_attention_kernel,
                               batch=B, num_heads=num_heads,
                               sparsity_threshold=sparsity_threshold)

    vmem = pl.BlockSpec(memory_space=pltpu.MemorySpace.VMEM)
    weights, out = pl.pallas_call(
        kernel,
        out_shape=(jax.ShapeDtypeStruct((B, L, L), jnp.float32),
                   jax.ShapeDtypeStruct((B, L, E), jnp.float32)),
        in_specs=[vmem, vmem, vmem, vmem],
        out_specs=(vmem, vmem),
    )(qk2d, vb, wqkT, bqk)

    # Match PyTorch return layout: output (L, B, E), weights (B, L, L).
    return out.transpose(1, 0, 2), weights


def sparse_attention_ref(q4, k4, v4, params, num_heads, thr=0.1):
    """Pure-JAX reference reproducing the PyTorch forward math."""
    B, C, H, W = q4.shape
    L, E = H * W, C
    head_dim = E // num_heads
    to_lbe = lambda x: x.reshape(B, C, L).transpose(2, 0, 1)   # (L, B, E)
    q, k, v = to_lbe(q4), to_lbe(k4), to_lbe(v4)

    qp = q @ params["wq"].T + params["bq"][0]
    kp = k @ params["wk"].T + params["bk"][0]

    def heads(x):
        return x.reshape(L, B * num_heads, head_dim).transpose(1, 0, 2)

    qh = heads(qp) / math.sqrt(head_dim)
    kh = heads(kp)
    s = jnp.matmul(qh, kh.transpose(0, 2, 1))
    p = jax.nn.softmax(s, axis=-1)
    w = p.reshape(B, num_heads, L, L).mean(axis=1)
    sw = w * (w > thr).astype(jnp.float32)
    sw = sw / (sw.sum(-1, keepdims=True) + 1e-6)
    out = jnp.matmul(sw, v.transpose(1, 0, 2)).transpose(1, 0, 2)
    return out, sw


if __name__ == "__main__":
    # Small shapes implied by the module: 4-D (B, C, H, W) inputs,
    # embed_dim = C = key_dim, sequence = H*W.
    B, C, H, W = 2, 32, 8, 8
    num_heads = 4
    sparsity_threshold = 0.1
    E = C

    key = jax.random.PRNGKey(0)
    kq, kk, kv, kw, kb = jax.random.split(key, 5)
    q4 = jax.random.normal(kq, (B, C, H, W), jnp.float32)
    k4 = jax.random.normal(kk, (B, C, H, W), jnp.float32)
    v4 = jax.random.normal(kv, (B, C, H, W), jnp.float32)

    # Deterministic synthetic nn.MultiheadAttention parameters:
    #   in_proj_weight (3E, E), in_proj_bias (3E,) -- only q/k slices matter.
    in_proj_weight = 0.3 * jax.random.normal(kw, (3 * E, E), jnp.float32)
    in_proj_bias = 0.05 * jax.random.normal(kb, (3 * E,), jnp.float32)
    params = {
        "wq": in_proj_weight[:E],
        "wk": in_proj_weight[E:2 * E],
        "bq": in_proj_bias[:E].reshape(1, E),
        "bk": in_proj_bias[E:2 * E].reshape(1, E),
    }
    # TODO(synk): out_proj / value-projection params exist in the module but do
    # not influence the returned tensors, so they are not materialized here.

    run = jax.jit(sparse_attention_pallas,
                  static_argnames=("num_heads", "sparsity_threshold"))
    out, w = run(q4, k4, v4, params, num_heads=num_heads,
                 sparsity_threshold=sparsity_threshold)
    out = jax.block_until_ready(out)
    w = jax.block_until_ready(w)

    out_ref, w_ref = sparse_attention_ref(q4, k4, v4, params, num_heads,
                                          sparsity_threshold)
    assert out.shape == (H * W, B, E) and w.shape == (B, H * W, H * W)
    assert jnp.allclose(out, out_ref, atol=1e-5, rtol=1e-5)
    assert jnp.allclose(w, w_ref, atol=1e-5, rtol=1e-5)

    print("KERNEL_OK")
</pallas_src>

<mosaic_0001>
module attributes {stable_mosaic.version = 11 : i64} {
  func.func @_sparse_attention_kernel(%arg0: memref<256x32xf32, #tpu.memory_space<vmem>>, %arg1: memref<2x64x32xf32, #tpu.memory_space<vmem>>, %arg2: memref<32x64xf32, #tpu.memory_space<vmem>>, %arg3: memref<1x64xf32, #tpu.memory_space<vmem>>, %arg4: memref<2x64x64xf32, #tpu.memory_space<vmem>>, %arg5: memref<2x64x32xf32, #tpu.memory_space<vmem>>) attributes {dimension_semantics = [], scalar_prefetch = 0 : i64, scratch_operands = 0 : i64, tpu.core_type = #tpu.core_type<tc>} {
    %c0 = arith.constant 0 : index
    %c0_0 = arith.constant 0 : index
    %0 = vector.load %arg0[%c0, %c0_0] : memref<256x32xf32, #tpu.memory_space<vmem>>, vector<256x32xf32>
    %c0_1 = arith.constant 0 : index
    %c0_2 = arith.constant 0 : index
    %1 = vector.load %arg2[%c0_1, %c0_2] : memref<32x64xf32, #tpu.memory_space<vmem>>, vector<32x64xf32>
    %cst = arith.constant dense<0.000000e+00> : vector<256x64xf32>
    %2 = tpu.matmul %0, %1, %cst {dimension_numbers = #tpu.dot_dimension_numbers<[1], [0], [0], [1], [0, 0, 1, 1], [], []>} : vector<256x32xf32>, vector<32x64xf32>, vector<256x64xf32> -> vector<256x64xf32>
    %c0_3 = arith.constant 0 : index
    %c0_4 = arith.constant 0 : index
    %3 = vector.load %arg3[%c0_3, %c0_4] : memref<1x64xf32, #tpu.memory_space<vmem>>, vector<1x64xf32>
    %4 = vector.broadcast %3 : vector<1x64xf32> to vector<256x64xf32>
    %5 = arith.addf %2, %4 : vector<256x64xf32>
    %6 = vector.extract_strided_slice %5 {offsets = [0, 0], sizes = [128, 32], strides = [1, 1]} : vector<256x64xf32> to vector<128x32xf32>
    %cst_5 = arith.constant 0.353553385 : f32
    %7 = vector.broadcast %cst_5 : f32 to vector<128x32xf32>
    %8 = arith.mulf %6, %7 : vector<128x32xf32>
    %9 = vector.extract_strided_slice %5 {offsets = [128, 32], sizes = [128, 32], strides = [1, 1]} : vector<256x64xf32> to vector<128x32xf32>
    %10 = vector.shape_cast %8 : vector<128x32xf32> to vector<2x64x32xf32>
    %11 = vector.shape_cast %9 : vector<128x32xf32> to vector<2x64x32xf32>
    %cst_6 = arith.constant 0.000000e+00 : f32
    %12 = vector.broadcast %cst_6 : f32 to vector<2x64x64xf32>
    %13 = vector.extract_strided_slice %10 {offsets = [0, 0, 0], sizes = [2, 64, 8], strides = [1, 1, 1]} : vector<2x64x32xf32> to vector<2x64x8xf32>
    %14 = vector.extract_strided_slice %11 {offsets = [0, 0, 0], sizes = [2, 64, 8], strides = [1, 1, 1]} : vector<2x64x32xf32> to vector<2x64x8xf32>
    "tpu.trace_start"() <{level = 10 : i32, message = "bqd,bkd->bqk"}> : () -> ()
    %cst_7 = arith.constant dense<0.000000e+00> : vector<2x64x64xf32>
    %15 = tpu.matmul %13, %14, %cst_7 {dimension_numbers = #tpu.dot_dimension_numbers<[2], [2], [1], [1], [0, 0, 0, 1, 1, 1], [0], [0]>} : vector<2x64x8xf32>, vector<2x64x8xf32>, vector<2x64x64xf32> -> vector<2x64x64xf32>
    "tpu.trace_stop"() : () -> ()
    %cst_8 = arith.constant dense<0xFF800000> : vector<2x64xf32>
    %16 = vector.multi_reduction <maximumf>, %15, %cst_8 [2] : vector<2x64x64xf32> to vector<2x64xf32>
    %17 = vector.shape_cast %16 : vector<2x64xf32> to vector<2x64x1xf32>
    %18 = vector.broadcast %17 : vector<2x64x1xf32> to vector<2x64x64xf32>
    %19 = arith.subf %15, %18 : vector<2x64x64xf32>
    %20 = math.exp %19 : vector<2x64x64xf32>
    %cst_9 = arith.constant dense<0.000000e+00> : vector<2x64xf32>
    %21 = vector.multi_reduction <add>, %20, %cst_9 [2] : vector<2x64x64xf32> to vector<2x64xf32>
    %22 = vector.shape_cast %21 : vector<2x64xf32> to vector<2x64x1xf32>
    %23 = tpu.reciprocal %22 : vector<2x64x1xf32> -> vector<2x64x1xf32>
    %24 = vector.broadcast %23 : vector<2x64x1xf32> to vector<2x64x64xf32>
    %25 = arith.mulf %20, %24 : vector<2x64x64xf32>
    %26 = arith.addf %12, %25 : vector<2x64x64xf32>
    %27 = vector.extract_strided_slice %10 {offsets = [0, 0, 8], sizes = [2, 64, 8], strides = [1, 1, 1]} : vector<2x64x32xf32> to vector<2x64x8xf32>
    %28 = vector.extract_strided_slice %11 {offsets = [0, 0, 8], sizes = [2, 64, 8], strides = [1, 1, 1]} : vector<2x64x32xf32> to vector<2x64x8xf32>
    "tpu.trace_start"() <{level = 10 : i32, message = "bqd,bkd->bqk"}> : () -> ()
    %cst_10 = arith.constant dense<0.000000e+00> : vector<2x64x64xf32>
    %29 = tpu.matmul %27, %28, %cst_10 {dimension_numbers = #tpu.dot_dimension_numbers<[2], [2], [1], [1], [0, 0, 0, 1, 1, 1], [0], [0]>} : vector<2x64x8xf32>, vector<2x64x8xf32>, vector<2x64x64xf32> -> vector<2x64x64xf32>
    "tpu.trace_stop"() : () -> ()
    %cst_11 = arith.constant dense<0xFF800000> : vector<2x64xf32>
    %30 = vector.multi_reduction <maximumf>, %29, %cst_11 [2] : vector<2x64x64xf32> to vector<2x64xf32>
    %31 = vector.shape_cast %30 : vector<2x64xf32> to vector<2x64x1xf32>
    %32 = vector.broadcast %31 : vector<2x64x1xf32> to vector<2x64x64xf32>
    %33 = arith.subf %29, %32 : vector<2x64x64xf32>
    %34 = math.exp %33 : vector<2x64x64xf32>
    %cst_12 = arith.constant dense<0.000000e+00> : vector<2x64xf32>
    %35 = vector.multi_reduction <add>, %34, %cst_12 [2] : vector<2x64x64xf32> to vector<2x64xf32>
    %36 = vector.shape_cast %35 : vector<2x64xf32> to vector<2x64x1xf32>
    %37 = tpu.reciprocal %36 : vector<2x64x1xf32> -> vector<2x64x1xf32>
    %38 = vector.broadcast %37 : vector<2x64x1xf32> to vector<2x64x64xf32>
    %39 = arith.mulf %34, %38 : vector<2x64x64xf32>
    %40 = arith.addf %26, %39 : vector<2x64x64xf32>
    %41 = vector.extract_strided_slice %10 {offsets = [0, 0, 16], sizes = [2, 64, 8], strides = [1, 1, 1]} : vector<2x64x32xf32> to vector<2x64x8xf32>
    %42 = vector.extract_strided_slice %11 {offsets = [0, 0, 16], sizes = [2, 64, 8], strides = [1, 1, 1]} : vector<2x64x32xf32> to vector<2x64x8xf32>
    "tpu.trace_start"() <{level = 10 : i32, message = "bqd,bkd->bqk"}> : () -> ()
    %cst_13 = arith.constant dense<0.000000e+00> : vector<2x64x64xf32>
    %43 = tpu.matmul %41, %42, %cst_13 {dimension_numbers = #tpu.dot_dimension_numbers<[2], [2], [1], [1], [0, 0, 0, 1, 1, 1], [0], [0]>} : vector<2x64x8xf32>, vector<2x64x8xf32>, vector<2x64x64xf32> -> vector<2x64x64xf32>
    "tpu.trace_stop"() : () -> ()
    %cst_14 = arith.constant dense<0xFF800000> : vector<2x64xf32>
    %44 = vector.multi_reduction <maximumf>, %43, %cst_14 [2] : vector<2x64x64xf32> to vector<2x64xf32>
    %45 = vector.shape_cast %44 : vector<2x64xf32> to vector<2x64x1xf32>
    %46 = vector.broadcast %45 : vector<2x64x1xf32> to vector<2x64x64xf32>
    %47 = arith.subf %43, %46 : vector<2x64x64xf32>
    %48 = math.exp %47 : vector<2x64x64xf32>
    %cst_15 = arith.constant dense<0.000000e+00> : vector<2x64xf32>
    %49 = vector.multi_reduction <add>, %48, %cst_15 [2] : vector<2x64x64xf32> to vector<2x64xf32>
    %50 = vector.shape_cast %49 : vector<2x64xf32> to vector<2x64x1xf32>
    %51 = tpu.reciprocal %50 : vector<2x64x1xf32> -> vector<2x64x1xf32>
    %52 = vector.broadcast %51 : vector<2x64x1xf32> to vector<2x64x64xf32>
    %53 = arith.mulf %48, %52 : vector<2x64x64xf32>
    %54 = arith.addf %40, %53 : vector<2x64x64xf32>
    %55 = vector.extract_strided_slice %10 {offsets = [0, 0, 24], sizes = [2, 64, 8], strides = [1, 1, 1]} : vector<2x64x32xf32> to vector<2x64x8xf32>
    %56 = vector.extract_strided_slice %11 {offsets = [0, 0, 24], sizes = [2, 64, 8], strides = [1, 1, 1]} : vector<2x64x32xf32> to vector<2x64x8xf32>
    "tpu.trace_start"() <{level = 10 : i32, message = "bqd,bkd->bqk"}> : () -> ()
    %cst_16 = arith.constant dense<0.000000e+00> : vector<2x64x64xf32>
    %57 = tpu.matmul %55, %56, %cst_16 {dimension_numbers = #tpu.dot_dimension_numbers<[2], [2], [1], [1], [0, 0, 0, 1, 1, 1], [0], [0]>} : vector<2x64x8xf32>, vector<2x64x8xf32>, vector<2x64x64xf32> -> vector<2x64x64xf32>
    "tpu.trace_stop"() : () -> ()
    %cst_17 = arith.constant dense<0xFF800000> : vector<2x64xf32>
    %58 = vector.multi_reduction <maximumf>, %57, %cst_17 [2] : vector<2x64x64xf32> to vector<2x64xf32>
    %59 = vector.shape_cast %58 : vector<2x64xf32> to vector<2x64x1xf32>
    %60 = vector.broadcast %59 : vector<2x64x1xf32> to vector<2x64x64xf32>
    %61 = arith.subf %57, %60 : vector<2x64x64xf32>
    %62 = math.exp %61 : vector<2x64x64xf32>
    %cst_18 = arith.constant dense<0.000000e+00> : vector<2x64xf32>
    %63 = vector.multi_reduction <add>, %62, %cst_18 [2] : vector<2x64x64xf32> to vector<2x64xf32>
    %64 = vector.shape_cast %63 : vector<2x64xf32> to vector<2x64x1xf32>
    %65 = tpu.reciprocal %64 : vector<2x64x1xf32> -> vector<2x64x1xf32>
    %66 = vector.broadcast %65 : vector<2x64x1xf32> to vector<2x64x64xf32>
    %67 = arith.mulf %62, %66 : vector<2x64x64xf32>
    %68 = arith.addf %54, %67 : vector<2x64x64xf32>
    %cst_19 = arith.constant 2.500000e-01 : f32
    %69 = vector.broadcast %cst_19 : f32 to vector<2x64x64xf32>
    %70 = arith.mulf %68, %69 : vector<2x64x64xf32>
    %cst_20 = arith.constant 1.000000e-01 : f32
    %71 = vector.broadcast %cst_20 : f32 to vector<2x64x64xf32>
    %72 = arith.cmpf ogt, %70, %71 : vector<2x64x64xf32>
    %cst_21 = arith.constant 0.000000e+00 : f32
    %73 = vector.broadcast %cst_21 : f32 to vector<2x64x64xf32>
    %74 = arith.select %72, %70, %73 : vector<2x64x64xi1>, vector<2x64x64xf32>
    %cst_22 = arith.constant dense<0.000000e+00> : vector<2x64xf32>
    %75 = vector.multi_reduction <add>, %74, %cst_22 [2] : vector<2x64x64xf32> to vector<2x64xf32>
    %76 = vector.shape_cast %75 : vector<2x64xf32> to vector<2x64x1xf32>
    %cst_23 = arith.constant 9.99999997E-7 : f32
    %77 = vector.broadcast %cst_23 : f32 to vector<2x64x1xf32>
    %78 = arith.addf %76, %77 : vector<2x64x1xf32>
    %79 = tpu.reciprocal %78 : vector<2x64x1xf32> -> vector<2x64x1xf32>
    %80 = vector.broadcast %79 : vector<2x64x1xf32> to vector<2x64x64xf32>
    %81 = arith.mulf %74, %80 : vector<2x64x64xf32>
    %c0_24 = arith.constant 0 : index
    %c0_25 = arith.constant 0 : index
    %c0_26 = arith.constant 0 : index
    %82 = vector.load %arg4[%c0_24, %c0_25, %c0_26] : memref<2x64x64xf32, #tpu.memory_space<vmem>>, vector<2x64x64xf32>
    tpu.vector_store %arg4[%c0_24, %c0_25, %c0_26], %81 {strides = array<i32>} : memref<2x64x64xf32, #tpu.memory_space<vmem>>, vector<2x64x64xf32>,
    %c0_27 = arith.constant 0 : index
    %c0_28 = arith.constant 0 : index
    %c0_29 = arith.constant 0 : index
    %83 = vector.load %arg1[%c0_27, %c0_28, %c0_29] : memref<2x64x32xf32, #tpu.memory_space<vmem>>, vector<2x64x32xf32>
    "tpu.trace_start"() <{level = 10 : i32, message = "bqk,bke->bqe"}> : () -> ()
    %cst_30 = arith.constant dense<0.000000e+00> : vector<2x64x32xf32>
    %84 = tpu.matmul %81, %83, %cst_30 {dimension_numbers = #tpu.dot_dimension_numbers<[2], [1], [1], [2], [0, 0, 0, 1, 1, 2], [0], [0]>} : vector<2x64x64xf32>, vector<2x64x32xf32>, vector<2x64x32xf32> -> vector<2x64x32xf32>
    "tpu.trace_stop"() : () -> ()
    %c0_31 = arith.constant 0 : index
    %c0_32 = arith.constant 0 : index
    %c0_33 = arith.constant 0 : index
    %85 = vector.load %arg5[%c0_31, %c0_32, %c0_33] : memref<2x64x32xf32, #tpu.memory_space<vmem>>, vector<2x64x32xf32>
    tpu.vector_store %arg5[%c0_31, %c0_32, %c0_33], %84 {strides = array<i32>} : memref<2x64x32xf32, #tpu.memory_space<vmem>>, vector<2x64x32xf32>,
    return
  }
}

</mosaic_0001>

<bundles_post_ra>
// kernel: sparse_attention_pallas.1
= control target key start
LH: loop header
LB: loop body
LE: loop exit
PB: predicated region body
PF: predicated region fallthrough
CT: control target
= control target key end

     0   :  { %vm63_vm0 = vcmask 261120   ;;  %s5883_s0 = inlined_call_operand.vmem [shape: f32[256,32], index: 0, kind: input, shape index: {}]   ;;  %s5884_s1 = inlined_call_operand.vmem [shape: f32[2,64,32], index: 1, kind: input, shape index: {}]   ;;  %s5885_s2 = inlined_call_operand.vmem [shape: f32[32,64], index: 2, kind: input, shape index: {}]   ;;  %s5886_s3 = inlined_call_operand.vmem [shape: f32[1,64], index: 3, kind: input, shape index: {}]   ;;  %s5887_s4 = inlined_call_operand.hbm [shape: f32[2,64,64], index: 4, kind: output, shape index: {0}]   ;;  %s5888_s5 = inlined_call_operand.vmem [shape: f32[2,64,32], index: 5, kind: output, shape index: {1}]  }
   0x1   :  { %v55_v0 = vld [vmem:[%s5885_s2 + $0x18] sm:$0xff]  ;;  %v54_v1 = vld [vmem:[%s5885_s2 + $0x10] sm:$0xff]  ;;  %v20_v2 = vld [vmem:[%s5883_s0] sm:$0xff] }
   0x2   :  { %3366 = vmatprep.subr.mxu0 %v55_v0  ;;  %v53_v3 = vld [vmem:[%s5885_s2 + $0x8] sm:$0xff]  ;;  %3374 = vmatprep.mubr.msk.f32.mxu0 %vm63_vm0, %v20_v2  ;;  %v52_v4 = vld [vmem:[%s5885_s2] sm:$0xff]  ;;  %v22_v6 = vld [vmem:[%s5883_s0 + $0x10] sm:$0xff] }
   0x3   :  { %3367 = vmatpush3.msra.mxu0 %v55_v0  ;;  %v21_v5 = vld [vmem:[%s5883_s0 + $0x8] sm:$0xff]  ;;  %v23_v7 = vld [vmem:[%s5883_s0 + $0x18] sm:$0xff]  ;;  %v24_v8 = vld [vmem:[%s5883_s0 + $0x20] sm:$0xff] }
   0x4   :  { %3368 = vmatprep.subr.mxu0 %v54_v1 }
   0x5   :  { %3369 = vmatpush3.msra.mxu0 %v54_v1 }
   0x6   :  { %3370 = vmatprep.subr.mxu0 %v53_v3 }
   0x7   :  { %3371 = vmatpush3.msra.mxu0 %v53_v3 }
   0x8   :  { %3372 = vmatprep.subr.mxu0 %v52_v4 }
   0x9   :  { %3373 = vmatpush3.msra.mxu0 %v52_v4 }
   0xa   :  { %3375 = vmatmul.mubr.msk.f32.vlgmr.msra.gmra.mxu0 %vm63_vm0, %v21_v5 }
   0xb   :  { %3377 = vmatprep.mubr.msk.f32.mxu0 %vm63_vm0, %v22_v6 }
   0xc   :  { %11 = vsyncpa [#allocation3], 0  ;;  %v25_v9 = vld [vmem:[%s5883_s0 + $0x28] sm:$0xff]  ;;  %v26_v10 = vld [vmem:[%s5883_s0 + $0x30] sm:$0xff]  ;;  %vm425_vm1 = vcmask 64512   ;;  %s4040_s14 = smov 88  }
   0xd   :  { %v27_v11 = vld [vmem:[%s5883_s0 + $0x38] sm:$0xff]  ;;  %v28_v12 = vld [vmem:[%s5883_s0 + $0x40] sm:$0xff]  ;;  %v29_v13 = vld [vmem:[%s5883_s0 + $0x48] sm:$0xff]  ;;  %s4041_s15 = smov 80   ;;  %s4042_s16 = smov 112   ;;  %vm740_vm2 = vcmask 523264  }
   0xe   :  { %3378 = vmatmul.mubr.msk.f32.gmra.mxu0 %vm63_vm0, %v23_v7  ;;  %v30_v14 = vld [vmem:[%s5883_s0 + $0x50] sm:$0xff]  ;;  %v31_v15 = vld [vmem:[%s5883_s0 + $0x58] sm:$0xff]  ;;  %v32_v16 = vld [vmem:[%s5883_s0 + $0x60] sm:$0xff]  ;;  %s4043_s17 = smov 72   ;;  %s4044_s18 = smov 104  }
   0xf   :  { %3380 = vmatprep.mubr.msk.f32.mxu0 %vm63_vm0, %v24_v8  ;;  %v33_v17 = vld [vmem:[%s5883_s0 + $0x68] sm:$0xff]  ;;  %v34_v18 = vld [vmem:[%s5883_s0 + $0x70] sm:$0xff]  ;;  %v35_v19 = vld [vmem:[%s5883_s0 + $0x78] sm:$0xff] }
  0x10   :  { %v36_v20 = vld [vmem:[%s5883_s0 + $0x80] sm:$0xff]  ;;  %v37_v21 = vld [vmem:[%s5883_s0 + $0x88] sm:$0xff]  ;;  %v38_v22 = vld [vmem:[%s5883_s0 + $0x90] sm:$0xff] }
  0x11   :  { %v39_v23 = vld [vmem:[%s5883_s0 + $0x98] sm:$0xff]  ;;  %v40_v24 = vld [vmem:[%s5883_s0 + $0xa0] sm:$0xff]  ;;  %v41_v25 = vld [vmem:[%s5883_s0 + $0xa8] sm:$0xff] }
  0x12   :  { %3381 = vmatmul.mubr.msk.f32.gmra.mxu0 %vm63_vm0, %v25_v9  ;;  %v42_v26 = vld [vmem:[%s5883_s0 + $0xb0] sm:$0xff]  ;;  %v43_v27 = vld [vmem:[%s5883_s0 + $0xb8] sm:$0xff]  ;;  %v44_v28 = vld [vmem:[%s5883_s0 + $0xc0] sm:$0xff] }
  0x13   :  { %3383 = vmatprep.mubr.msk.f32.mxu0 %vm63_vm0, %v26_v10  ;;  %v45_v29 = vld [vmem:[%s5883_s0 + $0xc8] sm:$0xff]  ;;  %v46_v30 = vld [vmem:[%s5883_s0 + $0xd0] sm:$0xff]  ;;  %v47_v31 = vld [vmem:[%s5883_s0 + $0xd8] sm:$0xff] }
  0x14   :  { %v48_v32 = vld [vmem:[%s5883_s0 + $0xe0] sm:$0xff]  ;;  %v49_v33 = vld [vmem:[%s5883_s0 + $0xe8] sm:$0xff]  ;;  %v50_v34 = vld [vmem:[%s5883_s0 + $0xf0] sm:$0xff] }
  0x15   :  { %v51_v35 = vld [vmem:[%s5883_s0 + $0xf8] sm:$0xff]  ;;  %v4221_v36 = vld [vmem:[%s5886_s3] ss:$0 sm:$0xff]  ;;  %s4038_s0 = smov 120   ;;  %s4039_s3 = smov 96  }
  0x16   :  { %3384 = vmatmul.mubr.msk.f32.gmra.mxu0 %vm63_vm0, %v27_v11 }
  0x17   :  { %3386 = vmatprep.mubr.msk.f32.mxu0 %vm63_vm0, %v28_v12 }
  0x1a   :  { %3387 = vmatmul.mubr.msk.f32.gmra.mxu0 %vm63_vm0, %v29_v13 }
  0x1b   :  { %3389 = vmatprep.mubr.msk.f32.mxu0 %vm63_vm0, %v30_v14 }
  0x1e   :  { %3390 = vmatmul.mubr.msk.f32.gmra.mxu0 %vm63_vm0, %v31_v15 }
  0x1f   :  { %3392 = vmatprep.mubr.msk.f32.mxu0 %vm63_vm0, %v32_v16 }
  0x22   :  { %3393 = vmatmul.mubr.msk.f32.gmra.mxu0 %vm63_vm0, %v33_v17 }
  0x23   :  { %3395 = vmatprep.mubr.msk.f32.mxu0 %vm63_vm0, %v34_v18 }
  0x26   :  { %3396 = vmatmul.mubr.msk.f32.gmra.mxu0 %vm63_vm0, %v35_v19 }
  0x27   :  { %3398 = vmatprep.mubr.msk.f32.mxu0 %vm63_vm0, %v36_v20 }
  0x2a   :  { %3399 = vmatmul.mubr.msk.f32.gmra.mxu0 %vm63_vm0, %v37_v21 }
  0x2b   :  { %3401 = vmatprep.mubr.msk.f32.mxu0 %vm63_vm0, %v38_v22 }
  0x2e   :  { %3402 = vmatmul.mubr.msk.f32.gmra.mxu0 %vm63_vm0, %v39_v23 }
  0x2f   :  { %3404 = vmatprep.mubr.msk.f32.mxu0 %vm63_vm0, %v40_v24 }
  0x32   :  { %3405 = vmatmul.mubr.msk.f32.gmra.mxu0 %vm63_vm0, %v41_v25 }
  0x33   :  { %3407 = vmatprep.mubr.msk.f32.mxu0 %vm63_vm0, %v42_v26 }
  0x36   :  { %3408 = vmatmul.mubr.msk.f32.gmra.mxu0 %vm63_vm0, %v43_v27 }
  0x37   :  { %3410 = vmatprep.mubr.msk.f32.mxu0 %vm63_vm0, %v44_v28 }
  0x3a   :  { %3411 = vmatmul.mubr.msk.f32.gmra.mxu0 %vm63_vm0, %v45_v29 }
  0x3b   :  { %3413 = vmatprep.mubr.msk.f32.mxu0 %vm63_vm0, %v46_v30 }
  0x3e   :  { %3414 = vmatmul.mubr.msk.f32.gmra.mxu0 %vm63_vm0, %v47_v31 }
  0x3f   :  { %3416 = vmatprep.mubr.msk.f32.mxu0 %vm63_vm0, %v48_v32 }
  0x42   :  { %3417 = vmatmul.mubr.msk.f32.gmra.mxu0 %vm63_vm0, %v49_v33 }
  0x43   :  { %3419 = vmatprep.mubr.msk.f32.mxu0 %vm63_vm0, %v50_v34 }
  0x46   :  { %3420 = vmatmul.mubr.msk.f32.gmra.mxu0 %vm63_vm0, %v51_v35 }
  0xca   :  { %v3376_v37 = vpop.f32.mrf.mxu0 }
  0xcb   :  { %v232_v38 = vadd.f32 %v3376_v37, %v4221_v36 }
  0xcc   :  { %v226_v39 = vpop.f32.mrf.mxu0 }
  0xcd   :  { %v4224_v40 = vmul.f32 0.35355338, %v232_v38  ;;  %v227_v41 = vadd.f32 %v4221_v36, %v226_v39 }
  0xce   :  { %v3379_v42 = vpop.f32.mrf.mxu0 }
  0xcf   :  { %v4227_v43 = vmul.f32 0.35355338, %v227_v41  ;;  %v4230_v44 = vadd.f32 %v3379_v42, %v4221_v36  ;;  %935 = vrot.lane.b32.xlu0 %v4224_v40, %s4038_s0 }
  0xd0   :  { %v236_v45 = vpop.f32.mrf.mxu0 }
  0xd1   :  { %v237_v46 = vadd.f32 %v4221_v36, %v236_v45  ;;  %933 = vrot.lane.b32.xlu1 %v4227_v43, %s4038_s0  ;;  %3438 = vmatprep.mubr.msk.f32.mxu1 %vm425_vm1, %v4227_v43 }
  0xd2   :  { %v3382_v47 = vpop.f32.mrf.mxu0 }
  0xd3   :  { %v4239_v48 = vmul.f32 0.35355338, %v237_v46  ;;  %v4242_v49 = vadd.f32 %v3382_v47, %v4221_v36  ;;  %v4403_v46 = vmul.f32 0.35355338, %v4230_v44 }
  0xd4   :  { %v246_v50 = vpop.f32.mrf.mxu0 }
  0xd5   :  { %v4245_v51 = vadd.f32 %v4221_v36, %v246_v50  ;;  %937 = vrot.lane.b32.xlu1 %v4239_v48, %s4038_s0 }
  0xd6   :  { %v3385_v52 = vpop.f32.mrf.mxu0 }
  0xd7   :  { %v4250_v53 = vadd.f32 %v3385_v52, %v4221_v36  ;;  %v4410_v47 = vmul.f32 0.35355338, %v4245_v51 }
  0xd8   :  { %v256_v54 = vpop.f32.mrf.mxu0 }
  0xd9   :  { %v4253_v55 = vadd.f32 %v4221_v36, %v256_v54 }
  0xda   :  { %v3388_v56 = vpop.f32.mrf.mxu0 }
  0xdb   :  { %v272_v57 = vadd.f32 %v3388_v56, %v4221_v36  ;;  %v4424_v44 = vmul.f32 0.35355338, %v4253_v55 }
  0xdc   :  { %v266_v58 = vpop.f32.mrf.mxu0 }
  0xdd   :  { %v4256_v59 = vmul.f32 0.35355338, %v272_v57  ;;  %v267_v60 = vadd.f32 %v4221_v36, %v266_v58 }
  0xde   :  { %v3391_v61 = vpop.f32.mrf.mxu0 }
  0xdf   :  { %v4259_v62 = vmul.f32 0.35355338, %v267_v60  ;;  %v4262_v63 = vadd.f32 %v3391_v61, %v4221_v36  ;;  %1104 = vrot.lane.b32.xlu0 %v4256_v59, %s4038_s0 }
  0xe0   :  { %v276_v0 = vpop.f32.mrf.mxu0 }
  0xe1   :  { %v4267_v1 = vadd.f32 %v4221_v36, %v276_v0  ;;  %1102 = vrot.lane.b32.xlu1 %v4259_v62, %s4038_s0  ;;  %v4450_v52 = vmul.f32 0.35355338, %v4262_v63 }
  0xe2   :  { %v3394_v2 = vpop.f32.mrf.mxu0 }
  0xe3   :  { %v4272_v3 = vadd.f32 %v3394_v2, %v4221_v36  ;;  %v4439_v51 = vmul.f32 0.35355338, %v4267_v1 }
  0xe4   :  { %v286_v4 = vpop.f32.mrf.mxu0 }
  0xe5   :  { %v4275_v5 = vadd.f32 %v4221_v36, %v286_v4  ;;  %v4476_v58 = vmul.f32 0.35355338, %v4272_v3 }
  0xe6   :  { %v3397_v6 = vpop.f32.mrf.mxu0 }
  0xe7   :  { %v4278_v7 = vadd.f32 %v3397_v6, %v4221_v36 }
  0xe8   :  { %v296_v8 = vpop.f32.mrf.mxu0 }
  0xe9   :  { %v4281_v9 = vadd.f32 %v4221_v36, %v296_v8  ;;  %v4496_v2 = vmul.f32 0.35355338, %v4278_v7 }
  0xea   :  { %v3400_v10 = vpop.f32.mrf.mxu0 }
  0xeb   :  { %v4284_v11 = vadd.f32 %v3400_v10, %v4221_v36  ;;  %v4479_v60 = vmul.f32 0.35355338, %v4281_v9 }
  0xec   :  { %v306_v12 = vpop.f32.mrf.mxu0 }
  0xed   :  { %411 = vrot.lane.b32.xlu0 %v4284_v11, %s4039_s3  ;;  %951 = vrot.lane.b32.xlu1 %v4284_v11, %s4040_s14  ;;  %v4291_v14 = vadd.f32 %v4221_v36, %v306_v12 }
  0xee   :  { %v3403_v13 = vpop.f32.mrf.mxu0 }
  0xef   :  { %v4294_v15 = vadd.f32 %v3403_v13, %v4221_v36 }
  0xf0   :  { %v316_v16 = vpop.f32.mrf.mxu0 }
  0xf1   :  { %415 = vrot.lane.b32.xlu0 %v4294_v15, %s4039_s3  ;;  %409 = vrot.lane.b32.xlu1 %v4291_v14, %s4039_s3  ;;  %v4301_v17 = vadd.f32 %v4221_v36, %v316_v16 }
  0xf2   :  { %v3406_v18 = vpop.f32.mrf.mxu0 }
  0xf3   :  { %v4304_v19 = vadd.f32 %v3406_v18, %v4221_v36 }
  0xf4   :  { %v326_v20 = vpop.f32.mrf.mxu0 }
  0xf5   :  { %1483 = vrot.lane.b32.xlu0 %v4301_v17, %s4041_s15  ;;  %949 = vrot.lane.b32.xlu1 %v4291_v14, %s4040_s14  ;;  %v4319_v21 = vadd.f32 %v4221_v36, %v326_v20 }
  0xf6   :  { %v3409_v22 = vpop.f32.mrf.mxu0 }
  0xf7   :  { %v4322_v23 = vadd.f32 %v3409_v22, %v4221_v36 }
  0xf8   :  { %v336_v24 = vpop.f32.mrf.mxu0 }
  0xf9   :  { %959 = vrot.lane.b32.xlu0 %v4304_v19, %s4040_s14  ;;  %955 = vrot.lane.b32.xlu1 %v4294_v15, %s4040_s14  ;;  %v4337_v25 = vadd.f32 %v4221_v36, %v336_v24 }
  0xfa   :  { %v3412_v26 = vpop.f32.mrf.mxu0 }
  0xfb   :  { %v4355_v30 = vadd.f32 %v3412_v26, %v4221_v36 }
  0xfc   :  { %v346_v27 = vpop.f32.mrf.mxu0 }
  0xfd   :  { %1489 = vrot.lane.b32.xlu0 %v4304_v19, %s4041_s15  ;;  %1485 = vrot.lane.b32.xlu1 %v4294_v15, %s4041_s15  ;;  %v4366_v32 = vadd.f32 %v4221_v36, %v346_v27 }
  0xfe   :  { %v3415_v28 = vpop.f32.mrf.mxu0 }
  0xff   :  { %v4348_v29 = vadd.f32 %v3415_v28, %v4221_v36 }
 0x100   :  { %v356_v31 = vpop.f32.mrf.mxu0 }
 0x101   :  { %1487 = vrot.lane.b32.xlu0 %v4319_v21, %s4041_s15  ;;  %413 = vrot.lane.b32.xlu1 %v4301_v17, %s4039_s3  ;;  %v4369_v33 = vadd.f32 %v4221_v36, %v356_v31 }
 0x102   :  { %v3418_v34 = vpop.f32.mrf.mxu0 }
 0x103   :  { %v4372_v35 = vadd.f32 %v3418_v34, %v4221_v36 }
 0x104   :  { %v366_v37 = vpop.f32.mrf.mxu0 }
 0x105   :  { %423 = vrot.lane.b32.xlu0 %v4322_v23, %s4039_s3  ;;  %953 = vrot.lane.b32.xlu1 %v4301_v17, %s4040_s14  ;;  %v4387_v38 = vadd.f32 %v4221_v36, %v366_v37 }
 0x106   :  { %v3421_v39 = vpop.f32.mrf.mxu0 }
 0x107   :  { %v382_v41 = vadd.f32 %v3421_v39, %v4221_v36 }
 0x108   :  { %v376_v42 = vpop.f32.mrf.mxu0 }
 0x109   :  { %963 = vrot.lane.b32.xlu0 %v4322_v23, %s4040_s14  ;;  %419 = vrot.lane.b32.xlu1 %v4304_v19, %s4039_s3  ;;  %v4397_v45 = vadd.f32 %v4221_v36, %v376_v42  ;;  %v4417_v36 = vmul.f32 0.35355338, %v4242_v49  ;;  %v4432_v49 = vmul.f32 0.35355338, %v4250_v53  ;;  %v4457_v53 = vmul.f32 0.35355338, %v4275_v5 }
 0x10d   :  { %421 = vrot.lane.b32.xlu0 %v4337_v25, %s4039_s3  ;;  %417 = vrot.lane.b32.xlu1 %v4319_v21, %s4039_s3 }
 0x111   :  { %961 = vrot.lane.b32.xlu0 %v4337_v25, %s4040_s14  ;;  %957 = vrot.lane.b32.xlu1 %v4319_v21, %s4040_s14 }
 0x115   :  { %1491 = vrot.lane.b32.xlu0 %v4337_v25, %s4041_s15  ;;  %1493 = vrot.lane.b32.xlu1 %v4322_v23, %s4041_s15 }
 0x119   :  { %585 = vrot.lane.b32.xlu0 %v4348_v29, %s4039_s3  ;;  %581 = vrot.lane.b32.xlu1 %v4355_v30, %s4039_s3 }
 0x11d   :  { %1124 = vrot.lane.b32.xlu0 %v4348_v29, %s4040_s14  ;;  %1120 = vrot.lane.b32.xlu1 %v4355_v30, %s4040_s14 }
 0x121   :  { %1122 = vrot.lane.b32.xlu0 %v4369_v33, %s4040_s14  ;;  %579 = vrot.lane.b32.xlu1 %v4366_v32, %s4039_s3 }
 0x125   :  { %589 = vrot.lane.b32.xlu0 %v4372_v35, %s4039_s3  ;;  %1118 = vrot.lane.b32.xlu1 %v4366_v32, %s4040_s14 }
 0x129   :  { %1128 = vrot.lane.b32.xlu0 %v4372_v35, %s4040_s14  ;;  %583 = vrot.lane.b32.xlu1 %v4369_v33, %s4039_s3 }
 0x12d   :  { %1126 = vrot.lane.b32.xlu0 %v4387_v38, %s4040_s14  ;;  %587 = vrot.lane.b32.xlu1 %v4387_v38, %s4039_s3 }
 0x131   :  { %593 = vrot.lane.b32.xlu0 %v382_v41, %s4039_s3  ;;  %1662 = vrot.lane.b32.xlu1 %v382_v41, %s4041_s15 }
 0x135   :  { %1132 = vrot.lane.b32.xlu0 %v382_v41, %s4040_s14  ;;  %591 = vrot.lane.b32.xlu1 %v4397_v45, %s4039_s3 }
 0x139   :  { %939 = vrot.lane.b32.xlu0 %v4403_v46, %s4038_s0  ;;  %1658 = vrot.lane.b32.xlu1 %v4372_v35, %s4041_s15 }
 0x13d   :  { %1481 = vrot.lane.b32.xlu0 %v4284_v11, %s4041_s15  ;;  %941 = vrot.lane.b32.xlu1 %v4410_v47, %s4038_s0 }
 0x141   :  { %943 = vrot.lane.b32.xlu0 %v4417_v36, %s4038_s0  ;;  %1656 = vrot.lane.b32.xlu1 %v4387_v38, %s4041_s15  ;;  %v4459_v54 = vpop.permute.xlu0 %935 }
 0x143   :  { %v934_v50 = vpop.permute.xlu1 %933 }
 0x144   :  { %3494 = vmatprep.mubr.msk.f32.mxu0 %vm425_vm1, %v934_v50 }
 0x145   :  { %1479 = vrot.lane.b32.xlu0 %v4291_v14, %s4041_s15  ;;  %945 = vrot.lane.b32.xlu1 %v4424_v44, %s4038_s0 }
 0x147   :  { %v4461_v55 = vpop.permute.xlu1 %937 }
 0x149   :  { %947 = vrot.lane.b32.xlu0 %v4432_v49, %s4038_s0  ;;  %1654 = vrot.lane.b32.xlu1 %v4348_v29, %s4041_s15 }
 0x14d   :  { %1463 = vrot.lane.b32.xlu0 %v4227_v43, %s4042_s16  ;;  %1106 = vrot.lane.b32.xlu1 %v4439_v51, %s4038_s0 }
 0x151   :  { %2023 = vrot.lane.b32.xlu0 %v4322_v23, %s4043_s17  ;;  %1652 = vrot.lane.b32.xlu1 %v4369_v33, %s4041_s15  ;;  %v4467_v56 = vpop.permute.xlu0 %1104 }
 0x153   :  { %v4469_v57 = vpop.permute.xlu1 %1102 }
 0x155   :  { %1465 = vrot.lane.b32.xlu0 %v4224_v40, %s4042_s16  ;;  %1108 = vrot.lane.b32.xlu1 %v4450_v52, %s4038_s0 }
 0x159   :  { %1130 = vrot.lane.b32.xlu0 %v4397_v45, %s4040_s14  ;;  %1110 = vrot.lane.b32.xlu1 %v4457_v53, %s4038_s0 }
 0x15d   :  { %1650 = vrot.lane.b32.xlu0 %v4355_v30, %s4041_s15  ;;  %2021 = vrot.lane.b32.xlu1 %v4337_v25, %s4043_s17 }
 0x15f   :  { %v4481_v61 = vpop.permute.xlu0 %411  ;;  %v4483_v63 = vpop.permute.xlu1 %951 }
 0x161   :  { %1112 = vrot.lane.b32.xlu0 %v4476_v58, %s4038_s0  ;;  %1114 = vrot.lane.b32.xlu1 %v4479_v60, %s4038_s0 }
 0x163   :  { %v416_v0 = vpop.permute.xlu0 %415  ;;  %v4489_v1 = vpop.permute.xlu1 %409 }
 0x165   :  { %1648 = vrot.lane.b32.xlu0 %v4366_v32, %s4041_s15  ;;  %2019 = vrot.lane.b32.xlu1 %v4304_v19, %s4043_s17 }
 0x167   :  { %v4498_v3 = vpop.permute.xlu0 %1483  ;;  %v4500_v4 = vpop.permute.xlu1 %949 }
 0x169   :  { %1116 = vrot.lane.b32.xlu0 %v4496_v2, %s4038_s0  ;;  %1632 = vrot.lane.b32.xlu1 %v4259_v62, %s4042_s16 }
 0x16b   :  { %v960_v5 = vpop.permute.xlu0 %959  ;;  %v956_v6 = vpop.permute.xlu1 %955 }
 0x16d   :  { %2017 = vrot.lane.b32.xlu0 %v4319_v21, %s4043_s17  ;;  %2192 = vrot.lane.b32.xlu1 %v382_v41, %s4043_s17 }
 0x16f   :  { %v4509_v8 = vpop.permute.xlu0 %1489  ;;  %v4511_v7 = vpop.permute.xlu1 %1485 }
 0x171   :  { %1634 = vrot.lane.b32.xlu0 %v4256_v59, %s4042_s16  ;;  %2015 = vrot.lane.b32.xlu1 %v4294_v15, %s4043_s17 }
 0x173   :  { %v4517_v9 = vpop.permute.xlu0 %1487  ;;  %v414_v10 = vpop.permute.xlu1 %413 }
 0x175   :  { %1469 = vrot.lane.b32.xlu0 %v4403_v46, %s4042_s16  ;;  %1467 = vrot.lane.b32.xlu1 %v4239_v48, %s4042_s16 }
 0x177   :  { %v424_v12 = vpop.permute.xlu0 %423  ;;  %v954_v13 = vpop.permute.xlu1 %953 }
 0x178   :  { %3422 = vmatprep.subr.msk.mxu1 %vm425_vm1, %v424_v12 }
 0x179   :  { %3423 = vmatpush3.xpose.msk.msra.mxu1 %vm425_vm1, %v424_v12  ;;  %1660 = vrot.lane.b32.xlu0 %v4397_v45, %s4041_s15 }
 0x17a   :  { %2013 = vrot.lane.b32.xlu1 %v4301_v17, %s4043_s17 }
 0x17b   :  { %v964_v15 = vpop.permute.xlu0 %963  ;;  %v420_v16 = vpop.permute.xlu1 %419 }
 0x17c   :  { %3478 = vmatprep.subr.msk.mxu0 %vm425_vm1, %v964_v15 }
 0x17d   :  { %3479 = vmatpush3.xpose.msk.msra.mxu0 %vm425_vm1, %v964_v15  ;;  %2188 = vrot.lane.b32.xlu0 %v4372_v35, %s4043_s17 }
 0x17e   :  { %1471 = vrot.lane.b32.xlu1 %v4410_v47, %s4042_s16 }
 0x17f   :  { %v422_v18 = vpop.permute.xlu0 %421  ;;  %v418_v19 = vpop.permute.xlu1 %417 }
 0x180   :  { %3424 = vmatprep.subr.msk.mxu1 %vm425_vm1, %v422_v18 }
 0x181   :  { %3425 = vmatpush3.xpose.msk.msra.mxu1 %vm425_vm1, %v422_v18  ;;  %1473 = vrot.lane.b32.xlu0 %v4417_v36, %s4042_s16 }
 0x182   :  { %2011 = vrot.lane.b32.xlu1 %v4284_v11, %s4043_s17  ;;  %3426 = vmatprep.subr.msk.mxu1 %vm425_vm1, %v420_v16 }
 0x183   :  { %v962_v17 = vpop.permute.xlu0 %961  ;;  %v958_v20 = vpop.permute.xlu1 %957 }
 0x184   :  { %3480 = vmatprep.subr.msk.mxu0 %vm425_vm1, %v962_v17 }
 0x185   :  { %3481 = vmatpush3.xpose.msk.msra.mxu0 %vm425_vm1, %v962_v17  ;;  %2186 = vrot.lane.b32.xlu0 %v4387_v38, %s4043_s17 }
 0x186   :  { %1475 = vrot.lane.b32.xlu1 %v4424_v44, %s4042_s16  ;;  %3427 = vmatpush3.xpose.msk.msra.mxu1 %vm425_vm1, %v420_v16 }
 0x187   :  { %3428 = vmatprep.subr.msk.mxu1 %vm425_vm1, %v418_v19  ;;  %3482 = vmatprep.subr.msk.mxu0 %vm425_vm1, %v960_v5  ;;  %v4551_v11 = vpop.permute.xlu0 %1491  ;;  %v1494_v21 = vpop.permute.xlu1 %1493 }
 0x189   :  { %3483 = vmatpush3.xpose.msk.msra.mxu0 %vm425_vm1, %v960_v5  ;;  %1477 = vrot.lane.b32.xlu0 %v4432_v49, %s4042_s16 }
 0x18a   :  { %2009 = vrot.lane.b32.xlu1 %v4291_v14, %s4043_s17  ;;  %3429 = vmatpush3.xpose.msk.msra.mxu1 %vm425_vm1, %v418_v19 }
 0x18b   :  { %3430 = vmatprep.subr.msk.mxu1 %vm425_vm1, %v416_v0  ;;  %3484 = vmatprep.subr.msk.mxu0 %vm425_vm1, %v958_v20  ;;  %v4561_v22 = vpop.permute.xlu0 %585  ;;  %v4563_v23 = vpop.permute.xlu1 %581 }
 0x18d   :  { %2184 = vrot.lane.b32.xlu0 %v4348_v29, %s4043_s17  ;;  %3485 = vmatpush3.xpose.msk.msra.mxu0 %vm425_vm1, %v958_v20 }
 0x18e   :  { %1636 = vrot.lane.b32.xlu1 %v4439_v51, %s4042_s16  ;;  %3431 = vmatpush3.xpose.msk.msra.mxu1 %vm425_vm1, %v416_v0 }
 0x18f   :  { %3432 = vmatprep.subr.msk.mxu1 %vm425_vm1, %v414_v10  ;;  %3486 = vmatprep.subr.msk.mxu0 %vm425_vm1, %v956_v6  ;;  %v4573_v14 = vpop.permute.xlu0 %1124  ;;  %v4575_v24 = vpop.permute.xlu1 %1120 }
 0x191   :  { %1993 = vrot.lane.b32.xlu0 %v4227_v43, %s4044_s18  ;;  %3487 = vmatpush3.xpose.msk.msra.mxu0 %vm425_vm1, %v956_v6 }
 0x192   :  { %1638 = vrot.lane.b32.xlu1 %v4450_v52, %s4042_s16  ;;  %3433 = vmatpush3.xpose.msk.msra.mxu1 %vm425_vm1, %v414_v10 }
 0x193   :  { %3434 = vmatprep.subr.msk.mxu1 %vm425_vm1, %v4481_v61  ;;  %3488 = vmatprep.subr.msk.mxu0 %vm425_vm1, %v954_v13  ;;  %v4586_v25 = vpop.permute.xlu0 %1122  ;;  %v4588_v26 = vpop.permute.xlu1 %579 }
 0x195   :  { %1995 = vrot.lane.b32.xlu0 %v4224_v40, %s4044_s18  ;;  %3489 = vmatpush3.xpose.msk.msra.mxu0 %vm425_vm1, %v954_v13 }
 0x196   :  { %2182 = vrot.lane.b32.xlu1 %v4369_v33, %s4043_s17  ;;  %3435 = vmatpush3.xpose.msk.msra.mxu1 %vm425_vm1, %v4481_v61 }
 0x197   :  { %3436 = vmatprep.subr.msk.mxu1 %vm425_vm1, %v4489_v1  ;;  %3490 = vmatprep.subr.msk.mxu0 %vm425_vm1, %v4483_v63  ;;  %v590_v43 = vpop.permute.xlu0 %589  ;;  %v4601_v27 = vpop.permute.xlu1 %1118 }
 0x199   :  { %2190 = vrot.lane.b32.xlu0 %v4397_v45, %s4043_s17  ;;  %3491 = vmatpush3.xpose.msk.msra.mxu0 %vm425_vm1, %v4483_v63 }
 0x19a   :  { %1997 = vrot.lane.b32.xlu1 %v4239_v48, %s4044_s18  ;;  %3437 = vmatpush3.xpose.msk.msra.mxu1 %vm425_vm1, %v4489_v1 }
 0x19b   :  { %3492 = vmatprep.subr.msk.mxu0 %vm425_vm1, %v4500_v4  ;;  %v4613_v28 = vpop.permute.xlu0 %1128  ;;  %v4615_v29 = vpop.permute.xlu1 %583 }
 0x19d   :  { %3439 = vmatmul.mubr.msk.f32.vlgmr.msra.gmra.mxu1 %vm425_vm1, %v4224_v40  ;;  %1640 = vrot.lane.b32.xlu0 %v4457_v53, %s4042_s16 }
 0x19e   :  { %1999 = vrot.lane.b32.xlu1 %v4403_v46, %s4044_s18  ;;  %3441 = vmatprep.mubr.msk.f32.mxu1 %vm425_vm1, %v4239_v48 }
 0x19f   :  { %3493 = vmatpush3.xpose.msk.msra.mxu0 %vm425_vm1, %v4500_v4  ;;  %v4627_v31 = vpop.permute.xlu0 %1126  ;;  %v588_v33 = vpop.permute.xlu1 %587 }
 0x1a0   :  { %3534 = vmatprep.subr.msk.mxu0 %vm425_vm1, %v1494_v21 }
 0x1a1   :  { %3442 = vmatmul.mubr.msk.f32.gmra.mxu1 %vm425_vm1, %v4403_v46  ;;  %1642 = vrot.lane.b32.xlu0 %v4476_v58, %s4042_s16 }
 0x1a2   :  { %3495 = vmatmul.mubr.msk.f32.vlgmr.msra.gmra.mxu0 %vm425_vm1, %v4459_v54  ;;  %1644 = vrot.lane.b32.xlu1 %v4479_v60, %s4042_s16 }
 0x1a3   :  { %3444 = vmatprep.mubr.msk.f32.mxu1 %vm425_vm1, %v4410_v47  ;;  %3497 = vmatprep.mubr.msk.f32.mxu0 %vm425_vm1, %v4461_v55  ;;  %v594_v40 = vpop.permute.xlu0 %593  ;;  %v4642_v48 = vpop.permute.xlu1 %1662 }
 0x1a4   :  { %3535 = vmatpush3.xpose.msk.msra.mxu0 %vm425_vm1, %v1494_v21  ;;  %3450 = vmatprep.subr.msk.mxu1 %vm425_vm1, %v594_v40 }
 0x1a5   :  { %3536 = vmatprep.subr.msk.mxu0 %vm425_vm1, %v4551_v11  ;;  %3445 = vmatmul.mubr.msk.f32.gmra.mxu1 %vm425_vm1, %v4417_v36 }
 0x1a6   :  { %2180 = vrot.lane.b32.xlu0 %v4355_v30, %s4043_s17  ;;  %1646 = vrot.lane.b32.xlu1 %v4496_v2, %s4042_s16 }
 0x1a7   :  { %3447 = vmatprep.mubr.msk.f32.mxu1 %vm425_vm1, %v4424_v44  ;;  %3451 = vmatpush3.xpose.msk.msra.mxu1 %vm425_vm1, %v594_v40  ;;  %v4657_v34 = vpop.permute.xlu0 %1132  ;;  %v592_v35 = vpop.permute.xlu1 %591 }
 0x1a8   :  { %3537 = vmatpush3.xpose.msk.msra.mxu0 %vm425_vm1, %v4551_v11  ;;  %3452 = vmatprep.subr.msk.mxu1 %vm425_vm1, %v592_v35 }
 0x1a9   :  { %3538 = vmatprep.subr.msk.mxu0 %vm425_vm1, %v4509_v8  ;;  %3448 = vmatmul.mubr.msk.f32.gmra.mxu1 %vm425_vm1, %v4432_v49 }
 0x1aa   :  { %2001 = vrot.lane.b32.xlu0 %v4410_v47, %s4044_s18  ;;  %2178 = vrot.lane.b32.xlu1 %v4366_v32, %s4043_s17 }
 0x1ab   :  { %3453 = vmatpush3.xpose.msk.msra.mxu1 %vm425_vm1, %v592_v35  ;;  %3466 = vmatprep.mubr.msk.f32.mxu1 %vm425_vm1, %v4259_v62  ;;  %v940_v30 = vpop.permute.xlu0 %939  ;;  %v4673_v37 = vpop.permute.xlu1 %1658 }
 0x1ac   :  { %3539 = vmatpush3.xpose.msk.msra.mxu0 %vm425_vm1, %v4509_v8  ;;  %3454 = vmatprep.subr.msk.mxu1 %vm425_vm1, %v590_v43 }
 0x1ad   :  { %3540 = vmatprep.subr.msk.mxu0 %vm425_vm1, %v4517_v9  ;;  %3498 = vmatmul.mubr.msk.f32.gmra.mxu0 %vm425_vm1, %v940_v30 }
 0x1ae   :  { %2003 = vrot.lane.b32.xlu0 %v4417_v36, %s4044_s18  ;;  %2162 = vrot.lane.b32.xlu1 %v4259_v62, %s4044_s18 }
 0x1af   :  { %3455 = vmatpush3.xpose.msk.msra.mxu1 %vm425_vm1, %v590_v43  ;;  %v1482_v32 = vpop.permute.xlu0 %1481  ;;  %v942_v38 = vpop.permute.xlu1 %941 }
 0x1b0   :  { %3541 = vmatpush3.xpose.msk.msra.mxu0 %vm425_vm1, %v4517_v9  ;;  %3456 = vmatprep.subr.msk.mxu1 %vm425_vm1, %v588_v33 }
 0x1b1   :  { %3542 = vmatprep.subr.msk.mxu0 %vm425_vm1, %v4511_v7  ;;  %3500 = vmatprep.mubr.msk.f32.mxu0 %vm425_vm1, %v942_v38 }
 0x1b2   :  { %2005 = vrot.lane.b32.xlu0 %v4424_v44, %s4044_s18  ;;  %2164 = vrot.lane.b32.xlu1 %v4256_v59, %s4044_s18 }
 0x1b3   :  { %3457 = vmatpush3.xpose.msk.msra.mxu1 %vm425_vm1, %v588_v33  ;;  %v944_v62 = vpop.permute.xlu0 %943  ;;  %v4697_v39 = vpop.permute.xlu1 %1656 }
 0x1b4   :  { %3543 = vmatpush3.xpose.msk.msra.mxu0 %vm425_vm1, %v4511_v7  ;;  %3458 = vmatprep.subr.msk.mxu1 %vm425_vm1, %v4561_v22 }
 0x1b5   :  { %3544 = vmatprep.subr.msk.mxu0 %vm425_vm1, %v4498_v3  ;;  %3501 = vmatmul.mubr.msk.f32.gmra.mxu0 %vm425_vm1, %v944_v62 }
 0x1b6   :  { %2007 = vrot.lane.b32.xlu0 %v4432_v49, %s4044_s18  ;;  %2168 = vrot.lane.b32.xlu1 %v4450_v52, %s4044_s18 }
 0x1b7   :  { %3459 = vmatpush3.xpose.msk.msra.mxu1 %vm425_vm1, %v4561_v22  ;;  %v1480_v41 = vpop.permute.xlu0 %1479  ;;  %v946_v42 = vpop.permute.xlu1 %945 }
 0x1b8   :  { %3545 = vmatpush3.xpose.msk.msra.mxu0 %vm425_vm1, %v4498_v3  ;;  %3460 = vmatprep.subr.msk.mxu1 %vm425_vm1, %v4615_v29 }
 0x1b9   :  { %3546 = vmatprep.subr.msk.mxu0 %vm425_vm1, %v1482_v32  ;;  %3503 = vmatprep.mubr.msk.f32.mxu0 %vm425_vm1, %v946_v42 }
 0x1ba   :  { %2166 = vrot.lane.b32.xlu0 %v4439_v51, %s4044_s18  ;;  %2172 = vrot.lane.b32.xlu1 %v4476_v58, %s4044_s18 }
 0x1bb   :  { %3461 = vmatpush3.xpose.msk.msra.mxu1 %vm425_vm1, %v4615_v29  ;;  %v948_v45 = vpop.permute.xlu0 %947  ;;  %v4724_v46 = vpop.permute.xlu1 %1654 }
 0x1bc   :  { %3547 = vmatpush3.xpose.msk.msra.mxu0 %vm425_vm1, %v1482_v32  ;;  %3462 = vmatprep.subr.msk.mxu1 %vm425_vm1, %v4563_v23 }
 0x1bd   :  { %3548 = vmatprep.subr.msk.mxu0 %vm425_vm1, %v1480_v41  ;;  %3504 = vmatmul.mubr.msk.f32.gmra.mxu0 %vm425_vm1, %v948_v45 }
 0x1be   :  { %2170 = vrot.lane.b32.xlu0 %v4457_v53, %s4044_s18  ;;  %2176 = vrot.lane.b32.xlu1 %v4496_v2, %s4044_s18 }
 0x1bf   :  { %3463 = vmatpush3.xpose.msk.msra.mxu1 %vm425_vm1, %v4563_v23  ;;  %v1464_v47 = vpop.permute.xlu0 %1463  ;;  %v4737_v36 = vpop.permute.xlu1 %1106 }
 0x1c0   :  { %3549 = vmatpush3.xpose.msk.msra.mxu0 %vm425_vm1, %v1480_v41  ;;  %3464 = vmatprep.subr.msk.mxu1 %vm425_vm1, %v4588_v26 }
 0x1c1   :  { %3550 = vmatprep.mubr.msk.f32.mxu0 %vm425_vm1, %v1464_v47 }
 0x1c2   :  { %2174 = vrot.lane.b32.xlu0 %v4479_v60, %s4044_s18 }
 0x1c3   :  { %3465 = vmatpush3.xpose.msk.msra.mxu1 %vm425_vm1, %v4588_v26  ;;  %v2024_v44 = vpop.permute.xlu0 %2023  ;;  %v4747_v50 = vpop.permute.xlu1 %1652 }
 0x1c4   :  { %3506 = vmatprep.subr.msk.mxu1 %vm425_vm1, %v4657_v34  ;;  %3590 = vmatprep.subr.msk.mxu0 %vm425_vm1, %v2024_v44 }
 0x1c6   :  { %3467 = vmatmul.mubr.msk.f32.vlgmr.msra.gmra.mxu1 %vm425_vm1, %v4256_v59 }
 0x1c7   :  { %3469 = vmatprep.mubr.msk.f32.mxu1 %vm425_vm1, %v4439_v51  ;;  %3507 = vmatpush3.xpose.msk.msra.mxu1 %vm425_vm1, %v4657_v34  ;;  %v1466_v49 = vpop.permute.xlu0 %1465  ;;  %v1109_v54 = vpop.permute.xlu1 %1108 }
 0x1c8   :  { %3551 = vmatmul.mubr.msk.f32.vlgmr.msra.gmra.mxu0 %vm425_vm1, %v1466_v49 }
 0x1c9   :  { %3591 = vmatpush3.xpose.msk.msra.mxu0 %vm425_vm1, %v2024_v44 }
 0x1ca   :  { %3470 = vmatmul.mubr.msk.f32.gmra.mxu1 %vm425_vm1, %v4450_v52 }
 0x1cb   :  { %3472 = vmatprep.mubr.msk.f32.mxu1 %vm425_vm1, %v4457_v53  ;;  %v1131_v55 = vpop.permute.xlu0 %1130  ;;  %v1111_v59 = vpop.permute.xlu1 %1110 }
 0x1cc   :  { %3508 = vmatprep.subr.msk.mxu1 %vm425_vm1, %v1131_v55 }
 0x1cd   :  { %3509 = vmatpush3.xpose.msk.msra.mxu1 %vm425_vm1, %v1131_v55 }
 0x1ce   :  { %3473 = vmatmul.mubr.msk.f32.gmra.mxu1 %vm425_vm1, %v4476_v58  ;;  %3510 = vmatprep.subr.msk.mxu1 %vm425_vm1, %v4613_v28 }
 0x1cf   :  { %3475 = vmatprep.mubr.msk.f32.mxu1 %vm425_vm1, %v4479_v60  ;;  %v4772_v51 = vpop.permute.xlu0 %1650  ;;  %v2022_v52 = vpop.permute.xlu1 %2021 }
 0x1d0   :  { %3592 = vmatprep.subr.msk.mxu0 %vm425_vm1, %v2022_v52 }
 0x1d1   :  { %3511 = vmatpush3.xpose.msk.msra.mxu1 %vm425_vm1, %v4613_v28  ;;  %3593 = vmatpush3.xpose.msk.msra.mxu0 %vm425_vm1, %v2022_v52 }
 0x1d2   :  { %3476 = vmatmul.mubr.msk.f32.gmra.mxu1 %vm425_vm1, %v4496_v2  ;;  %3512 = vmatprep.subr.msk.mxu1 %vm425_vm1, %v4627_v31 }
 0x1d3   :  { %3522 = vmatprep.mubr.msk.f32.mxu1 %vm425_vm1, %v4469_v57  ;;  %v1113_v53 = vpop.permute.xlu0 %1112  ;;  %v1115_v58 = vpop.permute.xlu1 %1114 }
 0x1d5   :  { %3513 = vmatpush3.xpose.msk.msra.mxu1 %vm425_vm1, %v4627_v31 }
 0x1d6   :  { %3514 = vmatprep.subr.msk.mxu1 %vm425_vm1, %v4573_v14 }
 0x1d7   :  { %v4788_v60 = vpop.permute.xlu0 %1648  ;;  %v2020_v61 = vpop.permute.xlu1 %2019 }
 0x1d8   :  { %3594 = vmatprep.subr.msk.mxu0 %vm425_vm1, %v2020_v61 }
 0x1d9   :  { %3515 = vmatpush3.xpose.msk.msra.mxu1 %vm425_vm1, %v4573_v14  ;;  %3595 = vmatpush3.xpose.msk.msra.mxu0 %vm425_vm1, %v2020_v61 }
 0x1da   :  { %3516 = vmatprep.subr.msk.mxu1 %vm425_vm1, %v4586_v25 }
 0x1db   :  { %v1117_v57 = vpop.permute.xlu0 %1116  ;;  %v1633_v63 = vpop.permute.xlu1 %1632 }
 0x1dd   :  { %3517 = vmatpush3.xpose.msk.msra.mxu1 %vm425_vm1, %v4586_v25 }
 0x1de   :  { %3518 = vmatprep.subr.msk.mxu1 %vm425_vm1, %v4575_v24 }
 0x1df   :  { %v2018_v0 = vpop.permute.xlu0 %2017  ;;  %v4800_v1 = vpop.permute.xlu1 %2192 }
 0x1e0   :  { %3596 = vmatprep.subr.msk.mxu0 %vm425_vm1, %v2018_v0 }
 0x1e1   :  { %3519 = vmatpush3.xpose.msk.msra.mxu1 %vm425_vm1, %v4575_v24  ;;  %3597 = vmatpush3.xpose.msk.msra.mxu0 %vm425_vm1, %v2018_v0 }
 0x1e2   :  { %3520 = vmatprep.subr.msk.mxu1 %vm425_vm1, %v4601_v27 }
 0x1e3   :  { %v1635_v2 = vpop.permute.xlu0 %1634  ;;  %v2016_v3 = vpop.permute.xlu1 %2015 }
 0x1e4   :  { %3598 = vmatprep.subr.msk.mxu0 %vm425_vm1, %v2016_v3 }
 0x1e5   :  { %3521 = vmatpush3.xpose.msk.msra.mxu1 %vm425_vm1, %v4601_v27  ;;  %3599 = vmatpush3.xpose.msk.msra.mxu0 %vm425_vm1, %v2016_v3 }
 0x1e6   :  { %3562 = vmatprep.subr.msk.mxu1 %vm425_vm1, %v4642_v48 }
 0x1e7   :  { %v1470_v4 = vpop.permute.xlu0 %1469  ;;  %v1468_v5 = vpop.permute.xlu1 %1467 }
 0x1e8   :  { %3523 = vmatmul.mubr.msk.f32.vlgmr.msra.gmra.mxu1 %vm425_vm1, %v4467_v56  ;;  %3553 = vmatprep.mubr.msk.f32.mxu0 %vm425_vm1, %v1468_v5 }
 0x1e9   :  { %3525 = vmatprep.mubr.msk.f32.mxu1 %vm425_vm1, %v4737_v36  ;;  %3554 = vmatmul.mubr.msk.f32.gmra.mxu0 %vm425_vm1, %v1470_v4 }
 0x1ea   :  { %3563 = vmatpush3.xpose.msk.msra.mxu1 %vm425_vm1, %v4642_v48 }
 0x1eb   :  { %v1661_v6 = vpop.permute.xlu0 %1660 }
 0x1ec   :  { %v2014_v8 = vpop.permute.xlu1 %2013  ;;  %3526 = vmatmul.mubr.msk.f32.gmra.mxu1 %vm425_vm1, %v1109_v54  ;;  %3564 = vmatprep.subr.msk.mxu1 %vm425_vm1, %v1661_v6 }
 0x1ed   :  { %3600 = vmatprep.subr.msk.mxu0 %vm425_vm1, %v2014_v8  ;;  %3528 = vmatprep.mubr.msk.f32.mxu1 %vm425_vm1, %v1111_v59 }
 0x1ee   :  { %3565 = vmatpush3.xpose.msk.msra.mxu1 %vm425_vm1, %v1661_v6  ;;  %3601 = vmatpush3.xpose.msk.msra.mxu0 %vm425_vm1, %v2014_v8 }
 0x1ef   :  { %3566 = vmatprep.subr.msk.mxu1 %vm425_vm1, %v4673_v37  ;;  %v2189_v56 = vpop.permute.xlu0 %2188 }
 0x1f0   :  { %v1472_v7 = vpop.permute.xlu1 %1471  ;;  %3529 = vmatmul.mubr.msk.f32.gmra.mxu1 %vm425_vm1, %v1113_v53 }
 0x1f1   :  { %3556 = vmatprep.mubr.msk.f32.mxu0 %vm425_vm1, %v1472_v7  ;;  %3531 = vmatprep.mubr.msk.f32.mxu1 %vm425_vm1, %v1115_v58 }
 0x1f2   :  { %3567 = vmatpush3.xpose.msk.msra.mxu1 %vm425_vm1, %v4673_v37 }
 0x1f3   :  { %3568 = vmatprep.subr.msk.mxu1 %vm425_vm1, %v4697_v39  ;;  %v1474_v9 = vpop.permute.xlu0 %1473 }
 0x1f4   :  { %v2012_v10 = vpop.permute.xlu1 %2011  ;;  %3532 = vmatmul.mubr.msk.f32.gmra.mxu1 %vm425_vm1, %v1117_v57  ;;  %3557 = vmatmul.mubr.msk.f32.gmra.mxu0 %vm425_vm1, %v1474_v9 }
 0x1f5   :  { %3602 = vmatprep.subr.msk.mxu0 %vm425_vm1, %v2012_v10  ;;  %3578 = vmatprep.mubr.msk.f32.mxu1 %vm425_vm1, %v1633_v63 }
 0x1f6   :  { %3569 = vmatpush3.xpose.msk.msra.mxu1 %vm425_vm1, %v4697_v39  ;;  %3603 = vmatpush3.xpose.msk.msra.mxu0 %vm425_vm1, %v2012_v10 }
 0x1f7   :  { %3570 = vmatprep.subr.msk.mxu1 %vm425_vm1, %v4724_v46  ;;  %v2187_v12 = vpop.permute.xlu0 %2186 }
 0x1f8   :  { %v1476_v13 = vpop.permute.xlu1 %1475 }
 0x1f9   :  { %3559 = vmatprep.mubr.msk.f32.mxu0 %vm425_vm1, %v1476_v13 }
 0x1fa   :  { %3571 = vmatpush3.xpose.msk.msra.mxu1 %vm425_vm1, %v4724_v46 }
 0x1fb   :  { %3572 = vmatprep.subr.msk.mxu1 %vm425_vm1, %v4747_v50  ;;  %v1478_v15 = vpop.permute.xlu0 %1477 }
 0x1fc   :  { %v2010_v16 = vpop.permute.xlu1 %2009  ;;  %3560 = vmatmul.mubr.msk.f32.gmra.mxu0 %vm425_vm1, %v1478_v15 }
 0x1fd   :  { %3604 = vmatprep.subr.msk.mxu0 %vm425_vm1, %v2010_v16 }
 0x1fe   :  { %3573 = vmatpush3.xpose.msk.msra.mxu1 %vm425_vm1, %v4747_v50  ;;  %3605 = vmatpush3.xpose.msk.msra.mxu0 %vm425_vm1, %v2010_v16 }
 0x1ff   :  { %3574 = vmatprep.subr.msk.mxu1 %vm425_vm1, %v4772_v51  ;;  %v2185_v18 = vpop.permute.xlu0 %2184 }
 0x200   :  { %v1637_v19 = vpop.permute.xlu1 %1636 }
 0x202   :  { %3575 = vmatpush3.xpose.msk.msra.mxu1 %vm425_vm1, %v4772_v51 }
 0x203   :  { %3576 = vmatprep.subr.msk.mxu1 %vm425_vm1, %v4788_v60  ;;  %v1994_v17 = vpop.permute.xlu0 %1993 }
 0x204   :  { %v1639_v20 = vpop.permute.xlu1 %1638  ;;  %3606 = vmatprep.mubr.msk.f32.mxu0 %vm425_vm1, %v1994_v17 }
 0x206   :  { %3577 = vmatpush3.xpose.msk.msra.mxu1 %vm425_vm1, %v4788_v60 }
 0x207   :  { %3618 = vmatprep.subr.msk.mxu1 %vm425_vm1, %v4800_v1  ;;  %v1996_v11 = vpop.permute.xlu0 %1995 }
 0x208   :  { %v2183_v21 = vpop.permute.xlu1 %2182  ;;  %3607 = vmatmul.mubr.msk.f32.vlgmr.msra.gmra.mxu0 %vm425_vm1, %v1996_v11 }
 0x209   :  { %3579 = vmatmul.mubr.msk.f32.vlgmr.msra.gmra.mxu1 %vm425_vm1, %v1635_v2 }
 0x20a   :  { %3581 = vmatprep.mubr.msk.f32.mxu1 %vm425_vm1, %v1637_v19  ;;  %3619 = vmatpush3.xpose.msk.msra.mxu1 %vm425_vm1, %v4800_v1 }
 0x20b   :  { %v2191_v22 = vpop.permute.xlu0 %2190 }
 0x20c   :  { %v1998_v23 = vpop.permute.xlu1 %1997  ;;  %3620 = vmatprep.subr.msk.mxu1 %vm425_vm1, %v2191_v22 }
 0x20d   :  { %3582 = vmatmul.mubr.msk.f32.gmra.mxu1 %vm425_vm1, %v1639_v20  ;;  %3609 = vmatprep.mubr.msk.f32.mxu0 %vm425_vm1, %v1998_v23 }
 0x20e   :  { %3621 = vmatpush3.xpose.msk.msra.mxu1 %vm425_vm1, %v2191_v22 }
 0x20f   :  { %3622 = vmatprep.subr.msk.mxu1 %vm425_vm1, %v2189_v56  ;;  %v1641_v14 = vpop.permute.xlu0 %1640 }
 0x210   :  { %v2000_v24 = vpop.permute.xlu1 %1999  ;;  %3584 = vmatprep.mubr.msk.f32.mxu1 %vm425_vm1, %v1641_v14 }
 0x211   :  { %3610 = vmatmul.mubr.msk.f32.gmra.mxu0 %vm425_vm1, %v2000_v24 }
 0x212   :  { %3623 = vmatpush3.xpose.msk.msra.mxu1 %vm425_vm1, %v2189_v56 }
 0x213   :  { %3624 = vmatprep.subr.msk.mxu1 %vm425_vm1, %v2187_v12  ;;  %v1643_v25 = vpop.permute.xlu0 %1642 }
 0x214   :  { %v1645_v26 = vpop.permute.xlu1 %1644  ;;  %3585 = vmatmul.mubr.msk.f32.gmra.mxu1 %vm425_vm1, %v1643_v25 }
 0x215   :  { %3587 = vmatprep.mubr.msk.f32.mxu1 %vm425_vm1, %v1645_v26 }
 0x216   :  { %3625 = vmatpush3.xpose.msk.msra.mxu1 %vm425_vm1, %v2187_v12 }
 0x217   :  { %3626 = vmatprep.subr.msk.mxu1 %vm425_vm1, %v2185_v18 }
 0x218   :  { %v2181_v43 = vpop.permute.xlu0 %2180  ;;  %v1647_v27 = vpop.permute.xlu1 %1646 }
 0x219   :  { %3588 = vmatmul.mubr.msk.f32.gmra.mxu1 %vm425_vm1, %v1647_v27 }
 0x21a   :  { %3627 = vmatpush3.xpose.msk.msra.mxu1 %vm425_vm1, %v2185_v18 }
 0x21b   :  { %3628 = vmatprep.subr.msk.mxu1 %vm425_vm1, %v2183_v21 }
 0x21c   :  { %v2002_v28 = vpop.permute.xlu0 %2001  ;;  %v2179_v29 = vpop.permute.xlu1 %2178 }
 0x21d   :  { %3612 = vmatprep.mubr.msk.f32.mxu0 %vm425_vm1, %v2002_v28 }
 0x21e   :  { %3629 = vmatpush3.xpose.msk.msra.mxu1 %vm425_vm1, %v2183_v21 }
 0x21f   :  { %3630 = vmatprep.subr.msk.mxu1 %vm425_vm1, %v2181_v43 }
 0x220   :  { %v2004_v31 = vpop.permute.xlu0 %2003  ;;  %v2163_v33 = vpop.permute.xlu1 %2162 }
 0x221   :  { %3613 = vmatmul.mubr.msk.f32.gmra.mxu0 %vm425_vm1, %v2004_v31  ;;  %3634 = vmatprep.mubr.msk.f32.mxu1 %vm425_vm1, %v2163_v33 }
 0x222   :  { %3631 = vmatpush3.xpose.msk.msra.mxu1 %vm425_vm1, %v2181_v43 }
 0x223   :  { %3632 = vmatprep.subr.msk.mxu1 %vm425_vm1, %v2179_v29 }
 0x224   :  { %v2006_v40 = vpop.permute.xlu0 %2005  ;;  %v2165_v48 = vpop.permute.xlu1 %2164 }
 0x225   :  { %3615 = vmatprep.mubr.msk.f32.mxu0 %vm425_vm1, %v2006_v40 }
 0x226   :  { %3633 = vmatpush3.xpose.msk.msra.mxu1 %vm425_vm1, %v2179_v29 }
 0x228   :  { %v2008_v34 = vpop.permute.xlu0 %2007  ;;  %v2169_v35 = vpop.permute.xlu1 %2168 }
 0x229   :  { %3616 = vmatmul.mubr.msk.f32.gmra.mxu0 %vm425_vm1, %v2008_v34  ;;  %3635 = vmatmul.mubr.msk.f32.vlgmr.msra.gmra.mxu1 %vm425_vm1, %v2165_v48 }
 0x22c   :  { %v2167_v30 = vpop.permute.xlu0 %2166  ;;  %v2173_v37 = vpop.permute.xlu1 %2172 }
 0x22d   :  { %3637 = vmatprep.mubr.msk.f32.mxu1 %vm425_vm1, %v2167_v30 }
 0x22e   :  { %3638 = vmatmul.mubr.msk.f32.gmra.mxu1 %vm425_vm1, %v2169_v35 }
 0x230   :  { %v2171_v32 = vpop.permute.xlu0 %2170  ;;  %v2177_v62 = vpop.permute.xlu1 %2176 }
 0x231   :  { %3640 = vmatprep.mubr.msk.f32.mxu1 %vm425_vm1, %v2171_v32 }
 0x232   :  { %3641 = vmatmul.mubr.msk.f32.gmra.mxu1 %vm425_vm1, %v2173_v37 }
 0x234   :  { %v2175_v38 = vpop.permute.xlu0 %2174 }
 0x235   :  { %3643 = vmatprep.mubr.msk.f32.mxu1 %vm425_vm1, %v2175_v38 }
 0x236   :  { %3644 = vmatmul.mubr.msk.f32.gmra.mxu1 %vm425_vm1, %v2177_v62 }
 0x25d   :  { %v4905_v39 = vpop.f32.mrf.mxu1 }
 0x25e   :  { %v744_v41 = vsel %vm740_vm2, %v4905_v39, -inf }
 0x25f   :  { %745 = vmax.xlane.f32.xlu0 %v744_v41  ;;  %v4913_v46 = vpop.f32.mrf.mxu1 }
 0x260   :  { %v741_v44 = vsel %vm740_vm2, %v4913_v46, -inf }
 0x261   :  { %v4921_v50 = vpop.f32.mrf.mxu1 }
 0x262   :  { %v4909_v42 = vpop.f32.mrf.mxu0  ;;  %v750_v49 = vsel %vm740_vm2, %v4921_v50, -inf }
 0x263   :  { %v1274_v45 = vsel %vm740_vm2, %v4909_v42, -inf  ;;  %v4925_v54 = vpop.f32.mrf.mxu1 }
 0x264   :  { %v4915_v47 = vpop.f32.mrf.mxu0  ;;  %1275 = vmax.xlane.f32.xlu0 %v1274_v45  ;;  %v747_v58 = vsel %vm740_vm2, %v4925_v54, -inf }
 0x265   :  { %v1271_v36 = vsel %vm740_vm2, %v4915_v47, -inf  ;;  %v4935_v53 = vpop.f32.mrf.mxu1 }
 0x266   :  { %1272 = vmax.xlane.f32.xlu1 %v1271_v36  ;;  %v756_v60 = vsel %vm740_vm2, %v4935_v53, -inf }
 0x267   :  { %v4941_v61 = vpop.f32.mrf.mxu1 }
 0x268   :  { %742 = vmax.xlane.f32.xlu0 %v741_v44  ;;  %v753_v3 = vsel %vm740_vm2, %v4941_v61, -inf }
 0x269   :  { %v4951_v2 = vpop.f32.mrf.mxu1 }
 0x26a   :  { %v762_v4 = vsel %vm740_vm2, %v4951_v2, -inf }
 0x26b   :  { %v4961_v8 = vpop.f32.mrf.mxu1 }
 0x26c   :  { %751 = vmax.xlane.f32.xlu0 %v750_v49  ;;  %v759_v9 = vsel %vm740_vm2, %v4961_v8, -inf }
 0x26d   :  { %v4927_v55 = vpop.f32.mrf.mxu0 }
 0x26e   :  { %v1280_v59 = vsel %vm740_vm2, %v4927_v55, -inf }
 0x26f   :  { %1281 = vmax.xlane.f32.xlu1 %v1280_v59  ;;  %v4931_v51 = vpop.f32.mrf.mxu0 }
 0x270   :  { %v1277_v52 = vsel %vm740_vm2, %v4931_v51, -inf }
 0x271   :  { %1278 = vmax.xlane.f32.xlu0 %v1277_v52 }
 0x273   :  { %748 = vmax.xlane.f32.xlu1 %v747_v58 }
 0x275   :  { %v4943_v57 = vpop.f32.mrf.mxu0  ;;  %757 = vmax.xlane.f32.xlu0 %v756_v60 }
 0x276   :  { %v1286_v63 = vsel %vm740_vm2, %v4943_v57, -inf }
 0x277   :  { %v4947_v0 = vpop.f32.mrf.mxu0  ;;  %1287 = vmax.xlane.f32.xlu1 %v1286_v63 }
 0x278   :  { %v1283_v1 = vsel %vm740_vm2, %v4947_v0, -inf }
 0x279   :  { %1284 = vmax.xlane.f32.xlu0 %v1283_v1 }
 0x27b   :  { %754 = vmax.xlane.f32.xlu1 %v753_v3 }
 0x27d   :  { %v4957_v5 = vpop.f32.mrf.mxu0  ;;  %763 = vmax.xlane.f32.xlu0 %v762_v4 }
 0x27e   :  { %v1292_v6 = vsel %vm740_vm2, %v4957_v5, -inf }
 0x27f   :  { %v4963_v56 = vpop.f32.mrf.mxu0  ;;  %1293 = vmax.xlane.f32.xlu1 %v1292_v6 }
 0x280   :  { %v1289_v7 = vsel %vm740_vm2, %v4963_v56, -inf }
 0x281   :  { %1290 = vmax.xlane.f32.xlu0 %v1289_v7 }
 0x283   :  { %760 = vmax.xlane.f32.xlu1 %v759_v9 }
 0x286   :  { %v4969_v10 = vpop.f32.mrf.mxu1 }
 0x287   :  { %v768_v19 = vsel %vm740_vm2, %v4969_v10, -inf }
 0x288   :  { %v4971_v12 = vpop.f32.mrf.mxu0  ;;  %v4979_v18 = vpop.f32.mrf.mxu1 }
 0x289   :  { %v1804_v13 = vsel %vm740_vm2, %v4971_v12, -inf  ;;  %v765_v17 = vsel %vm740_vm2, %v4979_v18, -inf }
 0x28a   :  { %v4975_v15 = vpop.f32.mrf.mxu0  ;;  %1805 = vmax.xlane.f32.xlu0 %v1804_v13  ;;  %v4985_v20 = vpop.f32.mrf.mxu1 }
 0x28b   :  { %v1801_v16 = vsel %vm740_vm2, %v4975_v15, -inf  ;;  %v774_v43 = vsel %vm740_vm2, %v4985_v20, -inf }
 0x28c   :  { %1802 = vmax.xlane.f32.xlu1 %v1801_v16  ;;  %v4987_v11 = vpop.f32.mrf.mxu1 }
 0x28d   :  { %v771_v27 = vsel %vm740_vm2, %v4987_v11, -inf }
 0x28e   :  { %769 = vmax.xlane.f32.xlu0 %v768_v19  ;;  %v4989_v21 = vpop.f32.mrf.mxu1 }
 0x28f   :  { %v780_v35 = vsel %vm740_vm2, %v4989_v21, -inf }
 0x290   :  { %766 = vmax.xlane.f32.xlu1 %v765_v17  ;;  %v4993_v23 = vpop.f32.mrf.mxu1 }
 0x291   :  { %v777_v30 = vsel %vm740_vm2, %v4993_v23, -inf }
 0x292   :  { %v5001_v26 = vpop.f32.mrf.mxu1 }
 0x293   :  { %v786_v62 = vsel %vm740_vm2, %v5001_v26, -inf }
 0x294   :  { %v5007_v28 = vpop.f32.mrf.mxu1 }
 0x295   :  { %v783_v36 = vsel %vm740_vm2, %v5007_v28, -inf }
 0x2a8   :  { %v5009_v29 = vpop.f32.mrf.mxu1 }
 0x2a9   :  { %v4991_v22 = vpop.f32.mrf.mxu0  ;;  %v1298_v59 = vsel %vm740_vm2, %v5009_v29, -inf }
 0x2aa   :  { %v1810_v14 = vsel %vm740_vm2, %v4991_v22, -inf  ;;  %v5019_v34 = vpop.f32.mrf.mxu1 }
 0x2ab   :  { %v4997_v24 = vpop.f32.mrf.mxu0  ;;  %1811 = vmax.xlane.f32.xlu0 %v1810_v14  ;;  %v1295_v4 = vsel %vm740_vm2, %v5019_v34, -inf }
 0x2ac   :  { %v1807_v25 = vsel %vm740_vm2, %v4997_v24, -inf  ;;  %v5025_v37 = vpop.f32.mrf.mxu1 }
 0x2ad   :  { %1808 = vmax.xlane.f32.xlu1 %v1807_v25  ;;  %v1304_v6 = vsel %vm740_vm2, %v5025_v37, -inf }
 0x2ae   :  { %v5033_v41 = vpop.f32.mrf.mxu1 }
 0x2af   :  { %775 = vmax.xlane.f32.xlu0 %v774_v43  ;;  %v1301_v25 = vsel %vm740_vm2, %v5033_v41, -inf }
 0x2b0   :  { %v5041_v49 = vpop.f32.mrf.mxu1 }
 0x2b1   :  { %772 = vmax.xlane.f32.xlu1 %v771_v27  ;;  %5932 = vst [vmem:[#allocation5_spill] sm:$0xff] %v5041_v49 }
 0x2b2   :  { %v5045_v52 = vpop.f32.mrf.mxu1 }
 0x2b3   :  { %5933 = vst [vmem:[#allocation6_spill] sm:$0xff] %v5045_v52 }
 0x2b4   :  { %v5011_v31 = vpop.f32.mrf.mxu0  ;;  %v5055_v3 = vpop.f32.mrf.mxu1 }
 0x2b5   :  { %v1816_v33 = vsel %vm740_vm2, %v5011_v31, -inf  ;;  %5934 = vst [vmem:[#allocation7_spill] sm:$0xff] %v5055_v3 }
 0x2b6   :  { %v5015_v40 = vpop.f32.mrf.mxu0  ;;  %1817 = vmax.xlane.f32.xlu0 %v1816_v33  ;;  %v5061_v7 = vpop.f32.mrf.mxu1 }
 0x2b7   :  { %v1813_v48 = vsel %vm740_vm2, %v5015_v40, -inf  ;;  %5935 = vst [vmem:[#allocation8_spill] sm:$0xff] %v5061_v7 }
 0x2b8   :  { %1814 = vmax.xlane.f32.xlu1 %v1813_v48 }
 0x2ba   :  { %781 = vmax.xlane.f32.xlu0 %v780_v35 }
 0x2bc   :  { %v5027_v32 = vpop.f32.mrf.mxu0  ;;  %778 = vmax.xlane.f32.xlu1 %v777_v30 }
 0x2bd   :  { %v1822_v38 = vsel %vm740_vm2, %v5027_v32, -inf }
 0x2be   :  { %1823 = vmax.xlane.f32.xlu0 %v1822_v38  ;;  %v5035_v45 = vpop.f32.mrf.mxu0 }
 0x2bf   :  { %v1819_v44 = vsel %vm740_vm2, %v5035_v45, -inf }
 0x2c0   :  { %787 = vmax.xlane.f32.xlu1 %v786_v62 }
 0x2c2   :  { %784 = vmax.xlane.f32.xlu0 %v783_v36  ;;  %v1310_v36 = vsel %vm740_vm2, %v5041_v49, -inf }
 0x2c4   :  { %1820 = vmax.xlane.f32.xlu1 %v1819_v44 }
 0x2c8   :  { %v5047_v58 = vpop.f32.mrf.mxu0  ;;  %1299 = vmax.xlane.f32.xlu1 %v1298_v59 }
 0x2c9   :  { %v2334_v60 = vsel %vm740_vm2, %v5047_v58, -inf  ;;  %v5065_v13 = vpop.f32.mrf.mxu1 }
 0x2ca   :  { %v5051_v63 = vpop.f32.mrf.mxu0  ;;  %2335 = vmax.xlane.f32.xlu0 %v2334_v60  ;;  %5936 = vst [vmem:[#allocation9_spill] sm:$0xff] %v5065_v13  ;;  %v1307_v60 = vsel %vm740_vm2, %v5045_v52, -inf }
 0x2cb   :  { %v2331_v1 = vsel %vm740_vm2, %v5051_v63, -inf  ;;  %v5073_v14 = vpop.f32.mrf.mxu1 }
 0x2cc   :  { %2332 = vmax.xlane.f32.xlu1 %v2331_v1  ;;  %5937 = vst [vmem:[#allocation10_spill] sm:$0xff] %v5073_v14 }
 0x2cd   :  { %v5077_v43 = vpop.f32.mrf.mxu1 }
 0x2ce   :  { %1296 = vmax.xlane.f32.xlu0 %v1295_v4  ;;  %5938 = vst [vmem:[#allocation11_spill] sm:$0xff] %v5077_v43 }
 0x2cf   :  { %v5079_v27 = vpop.f32.mrf.mxu1 }
 0x2d0   :  { %1305 = vmax.xlane.f32.xlu1 %v1304_v6  ;;  %5939 = vst [vmem:[#allocation12_spill] sm:$0xff] %v5079_v27 }
 0x2d1   :  { %v5063_v9 = vpop.f32.mrf.mxu0 }
 0x2d2   :  { %v2340_v16 = vsel %vm740_vm2, %v5063_v9, -inf }
 0x2d3   :  { %v5069_v19 = vpop.f32.mrf.mxu0  ;;  %2341 = vmax.xlane.f32.xlu0 %v2340_v16  ;;  %v1316_v16 = vsel %vm740_vm2, %v5055_v3, -inf }
 0x2d4   :  { %v2337_v17 = vsel %vm740_vm2, %v5069_v19, -inf  ;;  %v5081_v33 = vpop.f32.mrf.mxu1 }
 0x2d5   :  { %2338 = vmax.xlane.f32.xlu1 %v2337_v17 }
 0x2d6   :  { %v5089_v38 = vpop.f32.mrf.mxu1 }
 0x2d7   :  { %1302 = vmax.xlane.f32.xlu0 %v1301_v25 }
 0x2d9   :  { %v5095_v44 = vpop.f32.mrf.mxu1 }
 0x2da   :  { %5941 = vst [vmem:[#allocation14_spill] sm:$0xff] %v5095_v44  ;;  %v1846_v49 = vsel %vm740_vm2, %v5095_v44, -inf }
 0x2db   :  { %v5103_v6 = vpop.f32.mrf.mxu1 }
 0x2e1   :  { %v5083_v48 = vpop.f32.mrf.mxu0 }
 0x2e2   :  { %v2346_v35 = vsel %vm740_vm2, %v5083_v48, -inf }
 0x2e3   :  { %v5087_v30 = vpop.f32.mrf.mxu0  ;;  %2347 = vmax.xlane.f32.xlu0 %v2346_v35  ;;  %v1313_v35 = vsel %vm740_vm2, %v5061_v7, -inf }
 0x2e4   :  { %5940 = vst [vmem:[#allocation13_spill] sm:$0xff] %v5087_v30  ;;  %v2343_v62 = vsel %vm740_vm2, %v5087_v30, -inf }
 0x2e5   :  { %2344 = vmax.xlane.f32.xlu1 %v2343_v62 }
 0x2e7   :  { %1311 = vmax.xlane.f32.xlu0 %v1310_v36 }
 0x2e8   :  { %v746_v59 = vpop.xlane.xlu0 %745 }
 0x2e9   :  { %v5099_v1 = vpop.f32.mrf.mxu0  ;;  %1308 = vmax.xlane.f32.xlu1 %v1307_v60  ;;  %v5111_v62 = vpop.f32.mrf.mxu1 }
 0x2ea   :  { %5942 = vst [vmem:[#allocation15_spill] sm:$0xff] %v5099_v1  ;;  %v2352_v4 = vsel %vm740_vm2, %v5099_v1, -inf }
 0x2eb   :  { %2353 = vmax.xlane.f32.xlu0 %v2352_v4  ;;  %v5107_v17 = vpop.f32.mrf.mxu0  ;;  %v1828_v4 = vsel %vm740_vm2, %v5065_v13, -inf  ;;  %v5117_v1 = vpop.f32.mrf.mxu1 }
 0x2ec   :  { %5943 = vst [vmem:[#allocation16_spill] sm:$0xff] %v5107_v17  ;;  %v2349_v36 = vsel %vm740_vm2, %v5107_v17, -inf }
 0x2ed   :  { %v1276_v25 = vpop.xlane.xlu0 %1275  ;;  %1317 = vmax.xlane.f32.xlu1 %v1316_v16  ;;  %v1825_v16 = vsel %vm740_vm2, %v5073_v14, -inf }
 0x2ee   :  { %v5123_v52 = vpop.f32.mrf.mxu1  ;;  %v1320_v13 = vsub.f32 %v4909_v42, %v1276_v25  ;;  %v1843_v42 = vsel %vm740_vm2, %v5103_v6, -inf }
 0x2ef   :  { %1314 = vmax.xlane.f32.xlu0 %v1313_v35  ;;  %v1273_v3 = vpop.xlane.xlu1 %1272  ;;  %v1834_v35 = vsel %vm740_vm2, %v5077_v43, -inf }
 0x2f0   :  { %v5130_v14 = vpop.f32.mrf.mxu1  ;;  %v1337_v30 = vmul.f32 1.442695, %v1320_v13 }
 0x2f1   :  { %v743_v60 = vpop.xlane.xlu0 %742  ;;  %2350 = vmax.xlane.f32.xlu1 %v2349_v36  ;;  %v1831_v36 = vsel %vm740_vm2, %v5079_v27, -inf  ;;  %v1319_v27 = vsub.f32 %v4915_v47, %v1273_v3  ;;  %v2358_v47 = vsel %vm740_vm2, %v5111_v62, -inf }
 0x2f2   :  { %v5138_v25 = vpop.f32.mrf.mxu1  ;;  %3728 = vpow2.f32 %v1337_v30 }
 0x2f3   :  { %1829 = vmax.xlane.f32.xlu0 %v1828_v4 }
 0x2f4   :  { %v5146_v3 = vpop.f32.mrf.mxu1 }
 0x2f5   :  { %1826 = vmax.xlane.f32.xlu1 %v1825_v16  ;;  %v752_v7 = vpop.xlane.xlu0 %751  ;;  %v790_v16 = vsub.f32 %v4905_v39, %v746_v59  ;;  %v1837_v39 = vsel %vm740_vm2, %v5089_v38, -inf }
 0x2f6   :  { %v792_v13 = vsub.f32 %v4921_v50, %v752_v7  ;;  %v2364_v50 = vsel %vm740_vm2, %v5123_v52, -inf  ;;  %v5154_v7 = vpop.f32.mrf.mxu1 }
 0x2f7   :  { %1835 = vmax.xlane.f32.xlu0 %v1834_v35  ;;  %v1840_v35 = vsel %vm740_vm2, %v5081_v33, -inf  ;;  %v807_v44 = vmul.f32 1.442695, %v790_v16 }
 0x2f8   :  { %v1282_v17 = vpop.xlane.xlu1 %1281  ;;  %v811_v30 = vmul.f32 1.442695, %v792_v13 }
 0x2f9   :  { %1832 = vmax.xlane.f32.xlu1 %v1831_v36  ;;  %3730 = vpow2.f32 %v807_v44  ;;  %v1322_v16 = vsub.f32 %v4927_v55, %v1282_v17  ;;  %v2361_v17 = vsel %vm740_vm2, %v5130_v14, -inf }
 0x2fa   :  { %v1279_v4 = vpop.xlane.xlu0 %1278 }
 0x2fb   :  { %1847 = vmax.xlane.f32.xlu0 %v1846_v49  ;;  %v789_v49 = vsub.f32 %v4913_v46, %v743_v60  ;;  %v2355_v46 = vsel %vm740_vm2, %v5117_v1, -inf  ;;  %v1341_v44 = vmul.f32 1.442695, %v1322_v16 }
 0x2fc   :  { %v749_v43 = vpop.xlane.xlu1 %748 }
 0x2fd   :  { %1841 = vmax.xlane.f32.xlu1 %v1840_v35  ;;  %v1335_v35 = vmul.f32 1.442695, %v1319_v27  ;;  %v1321_v27 = vsub.f32 %v4931_v51, %v1279_v4  ;;  %v791_v55 = vsub.f32 %v4925_v54, %v749_v43  ;;  %v2376_v51 = vsel %vm740_vm2, %v5154_v7, -inf  ;;  %v5162_v4 = vpop.f32.mrf.mxu1 }
 0x2fe   :  { %v758_v36 = vpop.xlane.xlu0 %757  ;;  %v2370_v54 = vsel %vm740_vm2, %v5138_v25, -inf }
 0x2ff   :  { %1844 = vmax.xlane.f32.xlu0 %v1843_v42  ;;  %v805_v42 = vmul.f32 1.442695, %v789_v49  ;;  %3732 = vpow2.f32 %v1335_v35  ;;  %v1339_v49 = vmul.f32 1.442695, %v1321_v27  ;;  %v794_v35 = vsub.f32 %v4935_v53, %v758_v36 }
 0x300   :  { %v1288_v59 = vpop.xlane.xlu1 %1287  ;;  %v2373_v36 = vsel %vm740_vm2, %v5162_v4, -inf }
 0x301   :  { %1838 = vmax.xlane.f32.xlu1 %v1837_v39  ;;  %3734 = vpow2.f32 %v805_v42  ;;  %v1324_v42 = vsub.f32 %v4943_v57, %v1288_v59  ;;  %v815_v16 = vmul.f32 1.442695, %v794_v35  ;;  %v2367_v57 = vsel %vm740_vm2, %v5146_v3, -inf }
 0x302   :  { %v1285_v60 = vpop.xlane.xlu0 %1284  ;;  %3736 = vpow2.f32 %v811_v30 }
 0x303   :  { %2359 = vmax.xlane.f32.xlu0 %v2358_v47  ;;  %3738 = vpow2.f32 %v1341_v44  ;;  %v809_v47 = vmul.f32 1.442695, %v791_v55  ;;  %v1323_v53 = vsub.f32 %v4947_v0, %v1285_v60  ;;  %v1345_v30 = vmul.f32 1.442695, %v1324_v42 }
 0x304   :  { %v755_v39 = vpop.xlane.xlu1 %754  ;;  %3740 = vpow2.f32 %v1339_v49 }
 0x305   :  { %2356 = vmax.xlane.f32.xlu1 %v2355_v46  ;;  %v5170_v46 = vpop.eup %3728  ;;  %3742 = vpow2.f32 %v809_v47  ;;  %v793_v27 = vsub.f32 %v4941_v61, %v755_v39  ;;  %v1343_v44 = vmul.f32 1.442695, %v1323_v53 }
 0x306   :  { %v764_v13 = vpop.xlane.xlu0 %763  ;;  %v5175_v59 = vpop.eup %3730  ;;  %3744 = vpow2.f32 %v815_v16  ;;  %v1370_v60 = vsel %vm740_vm2, %v5170_v46, 0.0 }
 0x307   :  { %2365 = vmax.xlane.f32.xlu0 %v2364_v50  ;;  %v796_v0 = vsub.f32 %v4951_v2, %v764_v13  ;;  %3746 = vpow2.f32 %v1345_v30  ;;  %v813_v61 = vmul.f32 1.442695, %v793_v27  ;;  %v840_v49 = vsel %vm740_vm2, %v5175_v59, 0.0 }
 0x308   :  { %v1294_v43 = vpop.xlane.xlu1 %1293  ;;  %3748 = vpow2.f32 %v1343_v44 }
 0x309   :  { %2362 = vmax.xlane.f32.xlu1 %v2361_v17  ;;  %v1326_v39 = vsub.f32 %v4957_v5, %v1294_v43  ;;  %v819_v2 = vmul.f32 1.442695, %v796_v0  ;;  %3750 = vpow2.f32 %v813_v61 }
 0x30a   :  { %v1291_v50 = vpop.xlane.xlu0 %1290 }
 0x30b   :  { %2377 = vmax.xlane.f32.xlu0 %v2376_v51  ;;  %v1325_v13 = vsub.f32 %v4963_v56, %v1291_v50  ;;  %v1349_v5 = vmul.f32 1.442695, %v1326_v39  ;;  %3752 = vpow2.f32 %v819_v2 }
 0x30c   :  { %v5180_v55 = vpop.eup %3732  ;;  %v761_v17 = vpop.xlane.xlu1 %760 }
 0x30d   :  { %2371 = vmax.xlane.f32.xlu1 %v2370_v54  ;;  %v1367_v47 = vsel %vm740_vm2, %v5180_v55, 0.0  ;;  %v795_v43 = vsub.f32 %v4961_v8, %v761_v17  ;;  %3754 = vpow2.f32 %v1349_v5 }
 0x30e   :  { %v5185_v35 = vpop.eup %3734 }
 0x30f   :  { %2374 = vmax.xlane.f32.xlu0 %v2373_v36  ;;  %v5190_v42 = vpop.eup %3736  ;;  %v837_v16 = vsel %vm740_vm2, %v5185_v35, 0.0  ;;  %v1347_v36 = vmul.f32 1.442695, %v1325_v13  ;;  %v817_v50 = vmul.f32 1.442695, %v795_v43 }
 0x310   :  { %v5195_v53 = vpop.eup %3738  ;;  %v846_v30 = vsel %vm740_vm2, %v5190_v42, 0.0 }
 0x311   :  { %2368 = vmax.xlane.f32.xlu1 %v2367_v57  ;;  %v5200_v27 = vpop.eup %3740  ;;  %v1376_v44 = vsel %vm740_vm2, %v5195_v53, 0.0  ;;  %3756 = vpow2.f32 %v1347_v36 }
 0x312   :  { %v5205_v0 = vpop.eup %3742  ;;  %v1373_v61 = vsel %vm740_vm2, %v5200_v27, 0.0  ;;  %3758 = vpow2.f32 %v817_v50 }
 0x313   :  { %1371 = vadd.xlane.f32.xlu0 %v1370_v60  ;;  %v1806_v51 = vpop.xlane.xlu0 %1805  ;;  %v5210_v39 = vpop.eup %3744 }
 0x314   :  { %v1850_v56 = vsub.f32 %v4971_v12, %v1806_v51  ;;  %v843_v51 = vsel %vm740_vm2, %v5205_v0, 0.0  ;;  %v5215_v2 = vpop.eup %3746 }
 0x315   :  { %841 = vadd.xlane.f32.xlu1 %v840_v49  ;;  %v1803_v54 = vpop.xlane.xlu1 %1802  ;;  %v1382_v5 = vsel %vm740_vm2, %v5215_v2, 0.0 }
 0x316   :  { %v1849_v8 = vsub.f32 %v4975_v15, %v1803_v54  ;;  %v1867_v12 = vmul.f32 1.442695, %v1850_v56 }
 0x317   :  { %1368 = vadd.xlane.f32.xlu0 %v1367_v47  ;;  %v770_v57 = vpop.xlane.xlu0 %769  ;;  %v5219_v47 = vpop.eup %3748 }
 0x318   :  { %v798_v17 = vsub.f32 %v4969_v10, %v770_v57  ;;  %v1865_v49 = vmul.f32 1.442695, %v1849_v8  ;;  %3760 = vpow2.f32 %v1867_v12  ;;  %v852_v10 = vsel %vm740_vm2, %v5210_v39, 0.0 }
 0x319   :  { %838 = vadd.xlane.f32.xlu1 %v837_v16  ;;  %v767_v60 = vpop.xlane.xlu1 %766  ;;  %v1379_v43 = vsel %vm740_vm2, %v5219_v47, 0.0 }
 0x31a   :  { %v797_v15 = vsub.f32 %v4979_v18, %v767_v60  ;;  %v823_v13 = vmul.f32 1.442695, %v798_v17  ;;  %3762 = vpow2.f32 %v1865_v49  ;;  %v5223_v18 = vpop.eup %3750 }
 0x31b   :  { %847 = vadd.xlane.f32.xlu0 %v846_v30  ;;  %v5227_v16 = vpop.eup %3752  ;;  %v849_v36 = vsel %vm740_vm2, %v5223_v18, 0.0 }
 0x31c   :  { %v821_v54 = vmul.f32 1.442695, %v797_v15  ;;  %3764 = vpow2.f32 %v823_v13  ;;  %v5231_v56 = vpop.eup %3754  ;;  %v858_v30 = vsel %vm740_vm2, %v5227_v16, 0.0 }
 0x31d   :  { %1377 = vadd.xlane.f32.xlu1 %v1376_v44  ;;  %v1388_v50 = vsel %vm740_vm2, %v5231_v56, 0.0 }
 0x31e   :  { %3766 = vpow2.f32 %v821_v54  ;;  %v5235_v57 = vpop.eup %3756 }
 0x31f   :  { %1374 = vadd.xlane.f32.xlu0 %v1373_v61  ;;  %v5239_v8 = vpop.eup %3758  ;;  %v1385_v44 = vsel %vm740_vm2, %v5235_v57, 0.0 }
 0x320   :  { %v855_v12 = vsel %vm740_vm2, %v5239_v8, 0.0 }
 0x321   :  { %844 = vadd.xlane.f32.xlu1 %v843_v51 }
 0x323   :  { %853 = vadd.xlane.f32.xlu0 %v852_v10 }
 0x325   :  { %1383 = vadd.xlane.f32.xlu1 %v1382_v5  ;;  %v5243_v60 = vpop.eup %3760 }
 0x326   :  { %v1900_v61 = vsel %vm740_vm2, %v5243_v60, 0.0 }
 0x327   :  { %1380 = vadd.xlane.f32.xlu0 %v1379_v43  ;;  %v5247_v17 = vpop.eup %3762 }
 0x328   :  { %v1897_v51 = vsel %vm740_vm2, %v5247_v17, 0.0 }
 0x329   :  { %850 = vadd.xlane.f32.xlu1 %v849_v36  ;;  %v5251_v49 = vpop.eup %3764 }
 0x32a   :  { %5944 = vst [vmem:[#allocation17_spill] sm:$0xff] %v5251_v49  ;;  %v864_v5 = vsel %vm740_vm2, %v5251_v49, 0.0 }
 0x32b   :  { %859 = vadd.xlane.f32.xlu0 %v858_v30  ;;  %v5255_v13 = vpop.eup %3766 }
 0x32c   :  { %5945 = vst [vmem:[#allocation18_spill] sm:$0xff] %v5255_v13 }
 0x32d   :  { %1389 = vadd.xlane.f32.xlu1 %v1388_v50  ;;  %v861_v50 = vsel %vm740_vm2, %v5255_v13, 0.0 }
 0x32f   :  { %1386 = vadd.xlane.f32.xlu0 %v1385_v44 }
 0x331   :  { %856 = vadd.xlane.f32.xlu1 %v855_v12 }
 0x333   :  { %1901 = vadd.xlane.f32.xlu0 %v1900_v61 }
 0x334   :  { %v1812_v15 = vpop.xlane.xlu0 %1811 }
 0x335   :  { %v1852_v10 = vsub.f32 %v4991_v22, %v1812_v15  ;;  %1898 = vadd.xlane.f32.xlu1 %v1897_v51 }
 0x336   :  { %v1809_v54 = vpop.xlane.xlu1 %1808 }
 0x337   :  { %v1871_v43 = vmul.f32 1.442695, %v1852_v10  ;;  %v1851_v36 = vsub.f32 %v4997_v24, %v1809_v54  ;;  %865 = vadd.xlane.f32.xlu0 %v864_v5 }
 0x338   :  { %v776_v30 = vpop.xlane.xlu0 %775 }
 0x339   :  { %3768 = vpow2.f32 %v1871_v43  ;;  %v1869_v44 = vmul.f32 1.442695, %v1851_v36  ;;  %v800_v12 = vsub.f32 %v4985_v20, %v776_v30  ;;  %862 = vadd.xlane.f32.xlu1 %v861_v50 }
 0x33a   :  { %v773_v61 = vpop.xlane.xlu1 %772 }
 0x33b   :  { %3770 = vpow2.f32 %v1869_v44  ;;  %v827_v22 = vmul.f32 1.442695, %v800_v12  ;;  %v799_v15 = vsub.f32 %v4987_v11, %v773_v61 }
 0x33d   :  { %3772 = vpow2.f32 %v827_v22  ;;  %v825_v51 = vmul.f32 1.442695, %v799_v15 }
 0x33f   :  { %3774 = vpow2.f32 %v825_v51  ;;  %v1818_v10 = vpop.xlane.xlu0 %1817 }
 0x340   :  { %v1854_v24 = vsub.f32 %v5011_v31, %v1818_v10 }
 0x341   :  { %v1815_v54 = vpop.xlane.xlu1 %1814 }
 0x342   :  { %v1875_v5 = vmul.f32 1.442695, %v1854_v24  ;;  %v1853_v13 = vsub.f32 %v5015_v40, %v1815_v54 }
 0x343   :  { %v782_v43 = vpop.xlane.xlu0 %781 }
 0x344   :  { %3776 = vpow2.f32 %v1875_v5  ;;  %v1873_v36 = vmul.f32 1.442695, %v1853_v13  ;;  %v802_v20 = vsub.f32 %v4989_v21, %v782_v43 }
 0x345   :  { %v779_v30 = vpop.xlane.xlu1 %778 }
 0x346   :  { %v5268_v50 = vpop.eup %3768  ;;  %3778 = vpow2.f32 %v1873_v36  ;;  %v831_v11 = vmul.f32 1.442695, %v802_v20  ;;  %v801_v44 = vsub.f32 %v4993_v23, %v779_v30 }
 0x347   :  { %v1824_v12 = vpop.xlane.xlu0 %1823  ;;  %v1906_v31 = vsel %vm740_vm2, %v5268_v50, 0.0 }
 0x348   :  { %v5273_v61 = vpop.eup %3770  ;;  %3780 = vpow2.f32 %v831_v11  ;;  %v829_v40 = vmul.f32 1.442695, %v801_v44  ;;  %v1856_v22 = vsub.f32 %v5027_v32, %v1824_v12  ;;  %1907 = vadd.xlane.f32.xlu0 %v1906_v31 }
 0x349   :  { %v788_v13 = vpop.xlane.xlu1 %787  ;;  %v1903_v21 = vsel %vm740_vm2, %v5273_v61, 0.0 }
 0x34a   :  { %v5278_v15 = vpop.eup %3772  ;;  %3782 = vpow2.f32 %v829_v40  ;;  %v1879_v51 = vmul.f32 1.442695, %v1856_v22  ;;  %v804_v23 = vsub.f32 %v5001_v26, %v788_v13  ;;  %1904 = vadd.xlane.f32.xlu1 %v1903_v21 }
 0x34b   :  { %5946 = vst [vmem:[#allocation19_spill] sm:$0xff] %v5278_v15  ;;  %v785_v10 = vpop.xlane.xlu0 %784  ;;  %v870_v24 = vsel %vm740_vm2, %v5278_v15, 0.0 }
 0x34c   :  { %v5283_v54 = vpop.eup %3774  ;;  %3784 = vpow2.f32 %v1879_v51  ;;  %v835_v32 = vmul.f32 1.442695, %v804_v23  ;;  %v803_v5 = vsub.f32 %v5007_v28, %v785_v10  ;;  %871 = vadd.xlane.f32.xlu0 %v870_v24 }
 0x34d   :  { %5947 = vst [vmem:[#allocation20_spill] sm:$0xff] %v5283_v54  ;;  %v1821_v43 = vpop.xlane.xlu1 %1820  ;;  %v867_v36 = vsel %vm740_vm2, %v5283_v54, 0.0 }
 0x34e   :  { %3786 = vpow2.f32 %v835_v32  ;;  %v833_v20 = vmul.f32 1.442695, %v803_v5  ;;  %v1855_v26 = vsub.f32 %v5035_v45, %v1821_v43  ;;  %868 = vadd.xlane.f32.xlu1 %v867_v36 }
 0x350   :  { %3788 = vpow2.f32 %v833_v20  ;;  %v1877_v30 = vmul.f32 1.442695, %v1855_v26 }
 0x351   :  { %v5289_v11 = vpop.eup %3776  ;;  %v1300_v44 = vpop.xlane.xlu1 %1299 }
 0x352   :  { %3790 = vpow2.f32 %v1877_v30  ;;  %v1328_v12 = vsub.f32 %v5009_v29, %v1300_v44  ;;  %v1912_v28 = vsel %vm740_vm2, %v5289_v11, 0.0 }
 0x353   :  { %v5294_v31 = vpop.eup %3778  ;;  %1913 = vadd.xlane.f32.xlu0 %v1912_v28  ;;  %v2336_v40 = vpop.xlane.xlu0 %2335 }
 0x354   :  { %v1353_v22 = vmul.f32 1.442695, %v1328_v12  ;;  %v2380_v13 = vsub.f32 %v5047_v58, %v2336_v40  ;;  %v1909_v45 = vsel %vm740_vm2, %v5294_v31, 0.0 }
 0x355   :  { %v5299_v21 = vpop.eup %3780  ;;  %v2333_v51 = vpop.xlane.xlu1 %2332  ;;  %1910 = vadd.xlane.f32.xlu1 %v1909_v45 }
 0x356   :  { %5948 = vst [vmem:[#allocation21_spill] sm:$0xff] %v5299_v21  ;;  %3792 = vpow2.f32 %v1353_v22  ;;  %v2397_v23 = vmul.f32 1.442695, %v2380_v13  ;;  %v2379_v29 = vsub.f32 %v5051_v63, %v2333_v51  ;;  %v876_v10 = vsel %vm740_vm2, %v5299_v21, 0.0  ;;  %v5959_v21 = vld [vmem:[#allocation7_spill] sm:$0xff] }
 0x357   :  { %v5304_v24 = vpop.eup %3782  ;;  %877 = vadd.xlane.f32.xlu0 %v876_v10  ;;  %v1297_v32 = vpop.xlane.xlu0 %1296 }
 0x358   :  { %5949 = vst [vmem:[#allocation22_spill] sm:$0xff] %v5304_v24  ;;  %3794 = vpow2.f32 %v2397_v23  ;;  %v2395_v58 = vmul.f32 1.442695, %v2379_v29  ;;  %v1327_v5 = vsub.f32 %v5019_v34, %v1297_v32  ;;  %v873_v43 = vsel %vm740_vm2, %v5304_v24, 0.0  ;;  %v5961_v24 = vld [vmem:[#allocation16_spill] sm:$0xff] }
 0x359   :  { %v5309_v36 = vpop.eup %3784  ;;  %v1306_v20 = vpop.xlane.xlu1 %1305  ;;  %874 = vadd.xlane.f32.xlu1 %v873_v43 }
 0x35a   :  { %3796 = vpow2.f32 %v2395_v58  ;;  %v1351_v63 = vmul.f32 1.442695, %v1327_v5  ;;  %v1330_v26 = vsub.f32 %v5025_v37, %v1306_v20  ;;  %v1918_v30 = vsel %vm740_vm2, %v5309_v36, 0.0 }
 0x35b   :  { %v5314_v44 = vpop.eup %3786  ;;  %1919 = vadd.xlane.f32.xlu0 %v1918_v30 }
 0x35c   :  { %5950 = vst [vmem:[#allocation23_spill] sm:$0xff] %v5314_v44  ;;  %3798 = vpow2.f32 %v1351_v63  ;;  %v1357_v12 = vmul.f32 1.442695, %v1330_v26  ;;  %v2342_v34 = vpop.xlane.xlu0 %2341  ;;  %v882_v28 = vsel %vm740_vm2, %v5314_v44, 0.0 }
 0x35d   :  { %v5318_v40 = vpop.eup %3788  ;;  %v2382_v22 = vsub.f32 %v5063_v9, %v2342_v34  ;;  %883 = vadd.xlane.f32.xlu1 %v882_v28 }
 0x35e   :  { %5951 = vst [vmem:[#allocation24_spill] sm:$0xff] %v5318_v40  ;;  %3800 = vpow2.f32 %v1357_v12  ;;  %v2339_v13 = vpop.xlane.xlu1 %2338  ;;  %v879_v37 = vsel %vm740_vm2, %v5318_v40, 0.0 }
 0x35f   :  { %v5323_v45 = vpop.eup %3790  ;;  %v2401_v51 = vmul.f32 1.442695, %v2382_v22  ;;  %v2381_v23 = vsub.f32 %v5069_v19, %v2339_v13  ;;  %880 = vadd.xlane.f32.xlu0 %v879_v37 }
 0x360   :  { %v1303_v29 = vpop.xlane.xlu0 %1302  ;;  %v1915_v10 = vsel %vm740_vm2, %v5323_v45, 0.0 }
 0x361   :  { %3802 = vpow2.f32 %v2401_v51  ;;  %v2399_v32 = vmul.f32 1.442695, %v2381_v23  ;;  %v1329_v9 = vsub.f32 %v5033_v41, %v1303_v29  ;;  %1916 = vadd.xlane.f32.xlu1 %v1915_v10  ;;  %v5954_v23 = vld [vmem:[#allocation13_spill] sm:$0xff] }
 0x363   :  { %v5329_v58 = vpop.eup %3792  ;;  %3804 = vpow2.f32 %v2399_v32  ;;  %v1355_v5 = vmul.f32 1.442695, %v1329_v9 }
 0x364   :  { %v1394_v43 = vsel %vm740_vm2, %v5329_v58, 0.0 }
 0x365   :  { %v5333_v20 = vpop.eup %3794  ;;  %3806 = vpow2.f32 %v1355_v5  ;;  %1395 = vadd.xlane.f32.xlu1 %v1394_v43  ;;  %v5955_v43 = vld [vmem:[#allocation5_spill] sm:$0xff] }
 0x366   :  { %v2430_v19 = vsel %vm740_vm2, %v5333_v20, 0.0 }
 0x367   :  { %v5337_v63 = vpop.eup %3796  ;;  %2431 = vadd.xlane.f32.xlu0 %v2430_v19 }
 0x368   :  { %v2427_v41 = vsel %vm740_vm2, %v5337_v63, 0.0 }
 0x369   :  { %v5341_v26 = vpop.eup %3798  ;;  %2428 = vadd.xlane.f32.xlu1 %v2427_v41 }
 0x36a   :  { %5952 = vst [vmem:[#allocation25_spill] sm:$0xff] %v5341_v26  ;;  %v1391_v30 = vsel %vm740_vm2, %v5341_v26, 0.0 }
 0x36b   :  { %v5345_v12 = vpop.eup %3800  ;;  %1392 = vadd.xlane.f32.xlu0 %v1391_v30 }
 0x36c   :  { %5953 = vst [vmem:[#allocation26_spill] sm:$0xff] %v5345_v12  ;;  %v2348_v34 = vpop.xlane.xlu0 %2347  ;;  %v1400_v28 = vsel %vm740_vm2, %v5345_v12, 0.0 }
 0x36d   :  { %v2384_v22 = vsub.f32 %v5083_v48, %v2348_v34  ;;  %1401 = vadd.xlane.f32.xlu1 %v1400_v28  ;;  %v5957_v28 = vld [vmem:[#allocation6_spill] sm:$0xff] }
 0x36e   :  { %v5350_v13 = vpop.eup %3802  ;;  %v2345_v37 = vpop.xlane.xlu1 %2344 }
 0x36f   :  { %v2405_v51 = vmul.f32 1.442695, %v2384_v22  ;;  %v2383_v29 = vsub.f32 %v5954_v23, %v2345_v37  ;;  %v2436_v10 = vsel %vm740_vm2, %v5350_v13, 0.0 }
 0x370   :  { %v5355_v32 = vpop.eup %3804  ;;  %2437 = vadd.xlane.f32.xlu0 %v2436_v10  ;;  %v1312_v9 = vpop.xlane.xlu0 %1311 }
 0x371   :  { %3808 = vpow2.f32 %v2405_v51  ;;  %v2403_v5 = vmul.f32 1.442695, %v2383_v29  ;;  %v1332_v19 = vsub.f32 %v5955_v43, %v1312_v9  ;;  %v2433_v48 = vsel %vm740_vm2, %v5355_v32, 0.0  ;;  %v5958_v29 = vld [vmem:[#allocation15_spill] sm:$0xff] }
 0x372   :  { %v5360_v41 = vpop.eup %3806  ;;  %v1309_v30 = vpop.xlane.xlu1 %1308  ;;  %2434 = vadd.xlane.f32.xlu1 %v2433_v48 }
 0x373   :  { %5956 = vst [vmem:[#allocation13_spill] sm:$0xff] %v5360_v41  ;;  %3810 = vpow2.f32 %v2403_v5  ;;  %v1361_v34 = vmul.f32 1.442695, %v1332_v19  ;;  %v1331_v22 = vsub.f32 %v5957_v28, %v1309_v30  ;;  %v1397_v37 = vsel %vm740_vm2, %v5360_v41, 0.0  ;;  %v5960_v19 = vld [vmem:[#allocation8_spill] sm:$0xff] }
 0x374   :  { %1398 = vadd.xlane.f32.xlu0 %v1397_v37  ;;  %v2354_v23 = vpop.xlane.xlu0 %2353 }
 0x375   :  { %3812 = vpow2.f32 %v1361_v34  ;;  %v1359_v51 = vmul.f32 1.442695, %v1331_v22  ;;  %v2386_v10 = vsub.f32 %v5958_v29, %v2354_v23  ;;  %v5962_v22 = vld [vmem:[#allocation9_spill] sm:$0xff] }
 0x376   :  { %v1318_v9 = vpop.xlane.xlu1 %1317 }
 0x377   :  { %3814 = vpow2.f32 %v1359_v51  ;;  %v2409_v43 = vmul.f32 1.442695, %v2386_v10  ;;  %v1334_v44 = vsub.f32 %v5959_v21, %v1318_v9  ;;  %v5963_v10 = vld [vmem:[#allocation10_spill] sm:$0xff] }
 0x378   :  { %v1315_v40 = vpop.xlane.xlu0 %1314 }
 0x379   :  { %3816 = vpow2.f32 %v2409_v43  ;;  %v1365_v5 = vmul.f32 1.442695, %v1334_v44  ;;  %v1333_v48 = vsub.f32 %v5960_v19, %v1315_v40 }
 0x37a   :  { %v2351_v30 = vpop.xlane.xlu1 %2350 }
 0x37b   :  { %3818 = vpow2.f32 %v1365_v5  ;;  %v1363_v28 = vmul.f32 1.442695, %v1333_v48  ;;  %v2385_v37 = vsub.f32 %v5961_v24, %v2351_v30  ;;  %v5964_v5 = vld [vmem:[#allocation11_spill] sm:$0xff] }
 0x37c   :  { %v1830_v54 = vpop.xlane.xlu0 %1829 }
 0x37d   :  { %3820 = vpow2.f32 %v1363_v28  ;;  %v2407_v34 = vmul.f32 1.442695, %v2385_v37  ;;  %v1858_v23 = vsub.f32 %v5962_v22, %v1830_v54  ;;  %v5966_v37 = vld [vmem:[#allocation12_spill] sm:$0xff] }
 0x37e   :  { %v5370_v29 = vpop.eup %3808  ;;  %v1827_v51 = vpop.xlane.xlu1 %1826 }
 0x37f   :  { %3822 = vpow2.f32 %v2407_v34  ;;  %v1883_v21 = vmul.f32 1.442695, %v1858_v23  ;;  %v1857_v9 = vsub.f32 %v5963_v10, %v1827_v51  ;;  %v2442_v44 = vsel %vm740_vm2, %v5370_v29, 0.0  ;;  %v5968_v10 = vld [vmem:[#allocation14_spill] sm:$0xff] }
 0x380   :  { %v5375_v40 = vpop.eup %3810  ;;  %2443 = vadd.xlane.f32.xlu0 %v2442_v44  ;;  %v1836_v43 = vpop.xlane.xlu0 %1835 }
 0x381   :  { %3824 = vpow2.f32 %v1883_v21  ;;  %v1881_v24 = vmul.f32 1.442695, %v1857_v9  ;;  %v1860_v19 = vsub.f32 %v5964_v5, %v1836_v43  ;;  %v2439_v54 = vsel %vm740_vm2, %v5375_v40, 0.0 }
 0x382   :  { %v5380_v48 = vpop.eup %3812  ;;  %v1833_v30 = vpop.xlane.xlu1 %1832  ;;  %2440 = vadd.xlane.f32.xlu1 %v2439_v54 }
 0x383   :  { %5965 = vst [vmem:[#allocation5_spill] sm:$0xff] %v5380_v48  ;;  %3826 = vpow2.f32 %v1881_v24  ;;  %v1887_v28 = vmul.f32 1.442695, %v1860_v19  ;;  %v1859_v34 = vsub.f32 %v5966_v37, %v1833_v30  ;;  %v1406_v22 = vsel %vm740_vm2, %v5380_v48, 0.0 }
 0x384   :  { %v5385_v23 = vpop.eup %3814  ;;  %1407 = vadd.xlane.f32.xlu0 %v1406_v22  ;;  %v1848_v51 = vpop.xlane.xlu0 %1847 }
 0x385   :  { %5967 = vst [vmem:[#allocation6_spill] sm:$0xff] %v5385_v23  ;;  %3828 = vpow2.f32 %v1887_v28  ;;  %v1885_v21 = vmul.f32 1.442695, %v1859_v34  ;;  %v1864_v9 = vsub.f32 %v5968_v10, %v1848_v51  ;;  %v1403_v44 = vsel %vm740_vm2, %v5385_v23, 0.0 }
 0x386   :  { %v5390_v43 = vpop.eup %3816  ;;  %v1842_v24 = vpop.xlane.xlu1 %1841  ;;  %1404 = vadd.xlane.f32.xlu1 %v1403_v44 }
 0x387   :  { %3830 = vpow2.f32 %v1885_v21  ;;  %v1895_v5 = vmul.f32 1.442695, %v1864_v9  ;;  %v1862_v19 = vsub.f32 %v5081_v33, %v1842_v24  ;;  %v2448_v54 = vsel %vm740_vm2, %v5390_v43, 0.0 }
 0x388   :  { %v5395_v30 = vpop.eup %3818  ;;  %2449 = vadd.xlane.f32.xlu0 %v2448_v54  ;;  %v1845_v28 = vpop.xlane.xlu0 %1844 }
 0x389   :  { %5969 = vst [vmem:[#allocation15_spill] sm:$0xff] %v5395_v30  ;;  %3832 = vpow2.f32 %v1895_v5  ;;  %v1891_v37 = vmul.f32 1.442695, %v1862_v19  ;;  %v1863_v34 = vsub.f32 %v5103_v6, %v1845_v28  ;;  %v1412_v22 = vsel %vm740_vm2, %v5395_v30, 0.0 }
 0x38a   :  { %v5400_v51 = vpop.eup %3820  ;;  %v1839_v21 = vpop.xlane.xlu1 %1838  ;;  %1413 = vadd.xlane.f32.xlu1 %v1412_v22 }
 0x38b   :  { %5970 = vst [vmem:[#allocation7_spill] sm:$0xff] %v5400_v51  ;;  %3834 = vpow2.f32 %v1891_v37  ;;  %v1893_v33 = vmul.f32 1.442695, %v1863_v34  ;;  %v1861_v10 = vsub.f32 %v5089_v38, %v1839_v21  ;;  %v1409_v9 = vsel %vm740_vm2, %v5400_v51, 0.0 }
 0x38c   :  { %v5405_v44 = vpop.eup %3822  ;;  %1410 = vadd.xlane.f32.xlu0 %v1409_v9  ;;  %v2360_v24 = vpop.xlane.xlu0 %2359 }
 0x38d   :  { %3836 = vpow2.f32 %v1893_v33  ;;  %v1889_v6 = vmul.f32 1.442695, %v1861_v10  ;;  %v2388_v5 = vsub.f32 %v5111_v62, %v2360_v24  ;;  %v2445_v19 = vsel %vm740_vm2, %v5405_v44, 0.0 }
 0x38e   :  { %v5410_v54 = vpop.eup %3824  ;;  %v2357_v28 = vpop.xlane.xlu1 %2356  ;;  %2446 = vadd.xlane.f32.xlu1 %v2445_v19 }
 0x38f   :  { %5971 = vst [vmem:[#allocation8_spill] sm:$0xff] %v5410_v54  ;;  %3838 = vpow2.f32 %v1889_v6  ;;  %v2413_v38 = vmul.f32 1.442695, %v2388_v5  ;;  %v2387_v37 = vsub.f32 %v5117_v1, %v2357_v28  ;;  %v1924_v34 = vsel %vm740_vm2, %v5410_v54, 0.0 }
 0x390   :  { %v5415_v22 = vpop.eup %3826  ;;  %1925 = vadd.xlane.f32.xlu0 %v1924_v34  ;;  %v2366_v21 = vpop.xlane.xlu0 %2365 }
 0x391   :  { %5972 = vst [vmem:[#allocation16_spill] sm:$0xff] %v5415_v22  ;;  %3840 = vpow2.f32 %v2413_v38  ;;  %v2411_v62 = vmul.f32 1.442695, %v2387_v37  ;;  %v2390_v33 = vsub.f32 %v5123_v52, %v2366_v21  ;;  %v1921_v10 = vsel %vm740_vm2, %v5415_v22, 0.0 }
 0x392   :  { %v5420_v9 = vpop.eup %3828  ;;  %v2363_v24 = vpop.xlane.xlu1 %2362  ;;  %1922 = vadd.xlane.f32.xlu1 %v1921_v10 }
 0x393   :  { %5973 = vst [vmem:[#allocation9_spill] sm:$0xff] %v5420_v9  ;;  %3842 = vpow2.f32 %v2411_v62  ;;  %v2417_v1 = vmul.f32 1.442695, %v2390_v33  ;;  %v2389_v6 = vsub.f32 %v5130_v14, %v2363_v24  ;;  %v1930_v5 = vsel %vm740_vm2, %v5420_v9, 0.0 }
 0x394   :  { %v5425_v19 = vpop.eup %3830  ;;  %1931 = vadd.xlane.f32.xlu0 %v1930_v5  ;;  %v2378_v28 = vpop.xlane.xlu0 %2377 }
 0x395   :  { %5974 = vst [vmem:[#allocation10_spill] sm:$0xff] %v5425_v19  ;;  %3844 = vpow2.f32 %v2417_v1  ;;  %v2415_v52 = vmul.f32 1.442695, %v2389_v6  ;;  %v1927_v38 = vsel %vm740_vm2, %v5425_v19, 0.0  ;;  %v2394_v34 = vsub.f32 %v5154_v7, %v2378_v28 }
 0x396   :  { %v5429_v37 = vpop.eup %3832  ;;  %v2372_v21 = vpop.xlane.xlu1 %2371  ;;  %1928 = vadd.xlane.f32.xlu1 %v1927_v38 }
 0x397   :  { %5975 = vst [vmem:[#allocation11_spill] sm:$0xff] %v5429_v37  ;;  %3846 = vpow2.f32 %v2415_v52  ;;  %v1942_v14 = vsel %vm740_vm2, %v5429_v37, 0.0  ;;  %v2392_v10 = vsub.f32 %v5138_v25, %v2372_v21  ;;  %v2425_v7 = vmul.f32 1.442695, %v2394_v34 }
 0x398   :  { %v5434_v62 = vpop.eup %3834  ;;  %1943 = vadd.xlane.f32.xlu0 %v1942_v14  ;;  %v2375_v33 = vpop.xlane.xlu0 %2374 }
 0x399   :  { %5976 = vst [vmem:[#allocation12_spill] sm:$0xff] %v5434_v62  ;;  %v2393_v24 = vsub.f32 %v5162_v4, %v2375_v33  ;;  %v1936_v1 = vsel %vm740_vm2, %v5434_v62, 0.0  ;;  %v2421_v4 = vmul.f32 1.442695, %v2392_v10 }
 0x39a   :  { %v5440_v6 = vpop.eup %3836  ;;  %1937 = vadd.xlane.f32.xlu1 %v1936_v1  ;;  %v2369_v5 = vpop.xlane.xlu1 %2368 }
 0x39b   :  { %5977 = vst [vmem:[#allocation14_spill] sm:$0xff] %v5440_v6  ;;  %v2423_v28 = vmul.f32 1.442695, %v2393_v24  ;;  %v2391_v52 = vsub.f32 %v5146_v3, %v2369_v5  ;;  %v1939_v38 = vsel %vm740_vm2, %v5440_v6, 0.0 }
 0x39c   :  { %v5445_v14 = vpop.eup %3838  ;;  %1940 = vadd.xlane.f32.xlu0 %v1939_v38  ;;  %v5447_v25 = vpop.xlane.xlu0 %1371 }
 0x39d   :  { %5978 = vst [vmem:[#allocation27_spill] sm:$0xff] %v5445_v14  ;;  %3848 = vpow2.f32 %v2423_v28  ;;  %v2419_v21 = vmul.f32 1.442695, %v2391_v52  ;;  %v1933_v33 = vsel %vm740_vm2, %v5445_v14, 0.0 }
 0x39e   :  { %v5451_v34 = vpop.eup %3840  ;;  %3850 = vpow2.f32 %v2425_v7  ;;  %1934 = vadd.xlane.f32.xlu1 %v1933_v33  ;;  %v5453_v24 = vpop.xlane.xlu1 %841 }
 0x39f   :  { %5979 = vst [vmem:[#allocation28_spill] sm:$0xff] %v5451_v34  ;;  %3852 = vpow2.f32 %v2419_v21  ;;  %v2454_v3 = vsel %vm740_vm2, %v5451_v34, 0.0 }
 0x3a0   :  { %v5457_v1 = vpop.eup %3842  ;;  %2455 = vadd.xlane.f32.xlu0 %v2454_v3  ;;  %v5459_v5 = vpop.xlane.xlu0 %1368  ;;  %3854 = vpow2.f32 %v2421_v4 }
 0x3a1   :  { %5980 = vst [vmem:[#allocation29_spill] sm:$0xff] %v5457_v1  ;;  %v2451_v10 = vsel %vm740_vm2, %v5457_v1, 0.0 }
 0x3a2   :  { %v5463_v28 = vpop.eup %3844  ;;  %2452 = vadd.xlane.f32.xlu1 %v2451_v10  ;;  %v5465_v7 = vpop.xlane.xlu1 %838 }
 0x3a3   :  { %5981 = vst [vmem:[#allocation30_spill] sm:$0xff] %v5463_v28  ;;  %v2460_v52 = vsel %vm740_vm2, %v5463_v28, 0.0 }
 0x3a4   :  { %v5469_v38 = vpop.eup %3846  ;;  %2461 = vadd.xlane.f32.xlu0 %v2460_v52  ;;  %v5471_v21 = vpop.xlane.xlu0 %847 }
 0x3a5   :  { %5982 = vst [vmem:[#allocation31_spill] sm:$0xff] %v5469_v38  ;;  %v2457_v33 = vsel %vm740_vm2, %v5469_v38, 0.0 }
 0x3a6   :  { %2458 = vadd.xlane.f32.xlu1 %v2457_v33  ;;  %v5475_v4 = vpop.xlane.xlu1 %1377 }
 0x3a8   :  { %v5477_v3 = vpop.xlane.xlu0 %1374 }
 0x3aa   :  { %v5479_v62 = vpop.eup %3848  ;;  %v5481_v10 = vpop.xlane.xlu1 %844 }
 0x3ab   :  { %5983 = vst [vmem:[#allocation32_spill] sm:$0xff] %v5479_v62  ;;  %v5483_v48 = vpop.eup %3850  ;;  %v2469_v37 = vsel %vm740_vm2, %v5479_v62, 0.0 }
 0x3ac   :  { %5984 = vst [vmem:[#allocation33_spill] sm:$0xff] %v5483_v48  ;;  %v5487_v52 = vpop.eup %3852  ;;  %2470 = vadd.xlane.f32.xlu0 %v2469_v37  ;;  %v854_v14 = vpop.xlane.xlu0 %853  ;;  %v2472_v6 = vsel %vm740_vm2, %v5483_v48, 0.0 }
 0x3ad   :  { %5985 = vst [vmem:[#allocation34_spill] sm:$0xff] %v5487_v52  ;;  %3856 = vrcp.f32 %v854_v14  ;;  %v2463_v33 = vsel %vm740_vm2, %v5487_v52, 0.0  ;;  %v5491_v30 = vpop.eup %3854 }
 0x3ae   :  { %5986 = vst [vmem:[#allocation35_spill] sm:$0xff] %v5491_v30  ;;  %2464 = vadd.xlane.f32.xlu1 %v2463_v33  ;;  %v1384_v23 = vpop.xlane.xlu1 %1383  ;;  %v2466_v62 = vsel %vm740_vm2, %v5491_v30, 0.0 }
 0x3af   :  { %3858 = vrcp.f32 %v1384_v23 }
 0x3b0   :  { %2473 = vadd.xlane.f32.xlu0 %v2472_v6  ;;  %v1381_v38 = vpop.xlane.xlu0 %1380 }
 0x3b1   :  { %3860 = vrcp.f32 %v1381_v38 }
 0x3b2   :  { %2467 = vadd.xlane.f32.xlu1 %v2466_v62  ;;  %v851_v37 = vpop.xlane.xlu1 %850 }
 0x3b3   :  { %3862 = vrcp.f32 %v851_v37 }
 0x3b4   :  { %v860_v14 = vpop.xlane.xlu0 %859 }
 0x3b5   :  { %3864 = vrcp.f32 %v860_v14 }
 0x3b6   :  { %v1390_v52 = vpop.xlane.xlu1 %1389 }
 0x3b7   :  { %3866 = vrcp.f32 %v1390_v52 }
 0x3b8   :  { %v1387_v51 = vpop.xlane.xlu0 %1386 }
 0x3b9   :  { %3868 = vrcp.f32 %v1387_v51 }
 0x3ba   :  { %v3857_v33 = vpop.eup %3856  ;;  %v857_v23 = vpop.xlane.xlu1 %856 }
 0x3bb   :  { %3870 = vrcp.f32 %v857_v23  ;;  %v906_v6 = vmul.f32 %v3857_v33, %v5210_v39 }
 0x3bc   :  { %v3859_v28 = vpop.eup %3858  ;;  %3872 = vrcp.f32 %v5447_v25 }
 0x3bd   :  { %v1436_v38 = vmul.f32 %v3859_v28, %v5215_v2  ;;  %v1902_v28 = vpop.xlane.xlu0 %1901  ;;  %3874 = vrcp.f32 %v5453_v24 }
 0x3be   :  { %v3861_v48 = vpop.eup %3860  ;;  %3876 = vrcp.f32 %v5465_v7 }
 0x3bf   :  { %v5499_v1 = vadd.f32 %v1436_v38, %v906_v6  ;;  %v1435_v14 = vmul.f32 %v3861_v48, %v5219_v47  ;;  %3878 = vrcp.f32 %v1902_v28 }
 0x3c0   :  { %v3863_v62 = vpop.eup %3862  ;;  %3880 = vrcp.f32 %v5459_v5 }
 0x3c1   :  { %v905_v37 = vmul.f32 %v3863_v62, %v5223_v18  ;;  %v1899_v18 = vpop.xlane.xlu1 %1898  ;;  %v5513_v47 = vpop.xlane.xlu0 %865 }
 0x3c2   :  { %v3865_v30 = vpop.eup %3864  ;;  %3882 = vrcp.f32 %v1899_v18 }
 0x3c3   :  { %v5503_v52 = vadd.f32 %v1435_v14, %v905_v37  ;;  %v908_v19 = vmul.f32 %v3865_v30, %v5227_v16  ;;  %3884 = vrcp.f32 %v5471_v21 }
 0x3c4   :  { %v3867_v51 = vpop.eup %3866  ;;  %3886 = vrcp.f32 %v5475_v4 }
 0x3c5   :  { %v1438_v23 = vmul.f32 %v3867_v51, %v5231_v56  ;;  %v5515_v48 = vpop.xlane.xlu1 %862 }
 0x3c6   :  { %v3869_v34 = vpop.eup %3868 }
 0x3c7   :  { %v5507_v39 = vadd.f32 %v1438_v23, %v908_v19  ;;  %v1437_v6 = vmul.f32 %v3869_v34, %v5235_v57 }
 0x3c8   :  { %v3871_v2 = vpop.eup %3870 }
 0x3c9   :  { %v907_v33 = vmul.f32 %v3871_v2, %v5239_v8  ;;  %v3873_v7 = vpop.eup %3872 }
 0x3ca   :  { %v3875_v5 = vpop.eup %3874 }
 0x3cb   :  { %v5511_v38 = vadd.f32 %v1437_v6, %v907_v33  ;;  %v3877_v6 = vpop.eup %3876 }
 0x3cc   :  { %v3879_v21 = vpop.eup %3878  ;;  %v901_v9 = vmul.f32 %v3877_v6, %v5185_v35 }
 0x3cd   :  { %v3881_v18 = vpop.eup %3880 }
 0x3ce   :  { %v1431_v22 = vmul.f32 %v3881_v18, %v5180_v55 }
 0x3cf   :  { %v3883_v41 = vpop.eup %3882 }
 0x3d0   :  { %v1961_v12 = vmul.f32 %v3883_v41, %v5247_v17 }
 0x3d1   :  { %v1908_v62 = vpop.xlane.xlu0 %1907 }
 0x3d3   :  { %v1905_v16 = vpop.xlane.xlu1 %1904 }
 0x3d5   :  { %v5517_v30 = vpop.xlane.xlu0 %871 }
 0x3d7   :  { %v5519_v56 = vpop.xlane.xlu1 %868 }
 0x3dc   :  { %v1914_v19 = vpop.xlane.xlu0 %1913 }
 0x3de   :  { %v5521_v37 = vpop.xlane.xlu1 %1910 }
 0x3e0   :  { %v5523_v14 = vpop.xlane.xlu0 %877 }
 0x3e2   :  { %v5525_v8 = vpop.xlane.xlu1 %874 }
 0x3e4   :  { %v5527_v57 = vpop.xlane.xlu0 %1919 }
 0x3e6   :  { %v5529_v34 = vpop.xlane.xlu1 %883 }
 0x3e8   :  { %v5537_v23 = vpop.xlane.xlu0 %880 }
 0x3ea   :  { %v5534_v51 = vpop.xlane.xlu1 %1916 }
 0x3ee   :  { %v5539_v2 = vpop.xlane.xlu1 %1395 }
 0x3f0   :  { %v2432_v33 = vpop.xlane.xlu0 %2431 }
 0x3f1   :  { %3888 = vrcp.f32 %v2432_v33  ;;  %v902_v33 = vmul.f32 %v3875_v5, %v5175_v59 }
 0x3f2   :  { %3890 = vrcp.f32 %v5481_v10  ;;  %v2429_v25 = vpop.xlane.xlu1 %2428 }
 0x3f3   :  { %3892 = vrcp.f32 %v2429_v25  ;;  %v1962_v25 = vmul.f32 %v3879_v21, %v5243_v60 }
 0x3f4   :  { %3894 = vrcp.f32 %v1908_v62  ;;  %v5544_v24 = vpop.xlane.xlu0 %1392  ;;  %v1432_v62 = vmul.f32 %v3873_v7, %v5170_v46 }
 0x3f5   :  { %3896 = vrcp.f32 %v5477_v3  ;;  %v3885_v3 = vpop.eup %3884 }
 0x3f6   :  { %3898 = vrcp.f32 %v1905_v16  ;;  %v5547_v28 = vpop.xlane.xlu1 %1401  ;;  %v3887_v16 = vpop.eup %3886  ;;  %v1448_v15 = vadd.f32 %v1432_v62, %v902_v33  ;;  %v904_v17 = vmul.f32 %v3885_v3, %v5190_v42 }
 0x3f7   :  { %v1434_v6 = vmul.f32 %v3887_v16, %v5195_v53 }
 0x3f8   :  { %v1978_v59 = vadd.f32 %v1962_v25, %v1448_v15 }
 0x3f9   :  { %v2438_v4 = vpop.xlane.xlu0 %2437 }
 0x3fa   :  { %3900 = vrcp.f32 %v2438_v4  ;;  %v1447_v4 = vadd.f32 %v1431_v22, %v901_v9 }
 0x3fb   :  { %v2435_v10 = vpop.xlane.xlu1 %2434 }
 0x3fc   :  { %3902 = vrcp.f32 %v2435_v10  ;;  %v1977_v60 = vadd.f32 %v1961_v12, %v1447_v4  ;;  %v1450_v12 = vadd.f32 %v1434_v6, %v904_v17 }
 0x3fd   :  { %3904 = vrcp.f32 %v1914_v19 }
 0x3fe   :  { %v3889_v26 = vpop.eup %3888  ;;  %3906 = vrcp.f32 %v5521_v37 }
 0x3ff   :  { %v3891_v54 = vpop.eup %3890  ;;  %v2492_v5 = vmul.f32 %v3889_v26, %v5333_v20  ;;  %v5561_v26 = vpop.xlane.xlu0 %1398 }
 0x400   :  { %v3893_v49 = vpop.eup %3892  ;;  %v903_v20 = vmul.f32 %v3891_v54, %v5205_v0 }
 0x401   :  { %v3895_v46 = vpop.eup %3894  ;;  %v2508_v7 = vadd.f32 %v2492_v5, %v1978_v59  ;;  %v2491_v35 = vmul.f32 %v3893_v49, %v5337_v63 }
 0x402   :  { %v3897_v21 = vpop.eup %3896  ;;  %v1964_v15 = vmul.f32 %v3895_v46, %v5268_v50 }
 0x403   :  { %v3899_v33 = vpop.eup %3898  ;;  %v2524_v10 = vmul.f32 0.25, %v2508_v7  ;;  %v2507_v55 = vadd.f32 %v2491_v35, %v1977_v60  ;;  %v1433_v53 = vmul.f32 %v3897_v21, %v5200_v27 }
 0x404   :  { %v1963_v63 = vmul.f32 %v3899_v33, %v5273_v61  ;;  %v1980_v50 = vadd.f32 %v1964_v15, %v1450_v12 }
 0x405   :  { %vm2540_vm3 = vcmp.gt.f32.partialorder %v2524_v10, 0.1  ;;  %v2523_v41 = vmul.f32 0.25, %v2507_v55  ;;  %v1449_v9 = vadd.f32 %v1433_v53, %v903_v20 }
 0x406   :  { %v5564_v49 = vsel %vm2540_vm3, %v2524_v10, 0.0 }
 0x407   :  { %v3901_v22 = vpop.eup %3900  ;;  %v2574_v42 = vsel %vm740_vm2, %v5564_v49, 0.0  ;;  %vm2539_vm4 = vcmp.gt.f32.partialorder %v2523_v41, 0.1  ;;  %v1979_v61 = vadd.f32 %v1963_v63, %v1449_v9 }
 0x408   :  { %2575 = vadd.xlane.f32.xlu0 %v2574_v42  ;;  %v5570_v0 = vsel %vm2539_vm4, %v2523_v41, 0.0  ;;  %v2494_v54 = vmul.f32 %v3901_v22, %v5350_v13 }
 0x409   :  { %v3903_v19 = vpop.eup %3902  ;;  %v2444_v37 = vpop.xlane.xlu0 %2443  ;;  %v2571_v18 = vsel %vm740_vm2, %v5570_v0, 0.0 }
 0x40a   :  { %3908 = vrcp.f32 %v2444_v37  ;;  %2572 = vadd.xlane.f32.xlu1 %v2571_v18  ;;  %v2510_v27 = vadd.f32 %v2494_v54, %v1980_v50  ;;  %v2493_v62 = vmul.f32 %v3903_v19, %v5355_v32  ;;  %v3905_v7 = vpop.eup %3904  ;;  %v2686_v37 = vld [vmem:[%s5884_s1 + $0x18] sm:$0xff] }
 0x40b   :  { %3910 = vrcp.f32 %v5527_v57  ;;  %v2441_v25 = vpop.xlane.xlu1 %2440  ;;  %v3907_v35 = vpop.eup %3906  ;;  %v1966_v21 = vmul.f32 %v3905_v7, %v5289_v11  ;;  %v2690_v11 = vld [vmem:[%s5884_s1 + $0x38] sm:$0xff] }
 0x40c   :  { %3912 = vrcp.f32 %v2441_v25  ;;  %v2526_v3 = vmul.f32 0.25, %v2510_v27  ;;  %v2509_v16 = vadd.f32 %v2493_v62, %v1979_v61  ;;  %v1965_v10 = vmul.f32 %v3907_v35, %v5294_v31  ;;  %3646 = vmatprep.subr.mxu0 %v2690_v11  ;;  %v2685_v27 = vld [vmem:[%s5884_s1 + $0x10] sm:$0xff] }
 0x40d   :  { %v5577_v59 = vpop.xlane.xlu0 %1407  ;;  %3914 = vrcp.f32 %v5534_v51  ;;  %v1982_v15 = vadd.f32 %v1966_v21, %v5499_v1  ;;  %3647 = vmatpush3.msra.mxu0 %v2690_v11 }
 0x40e   :  { %vm2542_vm5 = vcmp.gt.f32.partialorder %v2526_v3, 0.1  ;;  %v2525_v13 = vmul.f32 0.25, %v2509_v16  ;;  %v1981_v31 = vadd.f32 %v1965_v10, %v5503_v52 }
 0x40f   :  { %v5579_v5 = vpop.xlane.xlu1 %1404  ;;  %v5581_v4 = vsel %vm2542_vm5, %v2526_v3, 0.0 }
 0x410   :  { %v2580_v46 = vsel %vm740_vm2, %v5581_v4, 0.0  ;;  %vm2541_vm6 = vcmp.gt.f32.partialorder %v2525_v13, 0.1 }
 0x411   :  { %2581 = vadd.xlane.f32.xlu0 %v2580_v46  ;;  %v2450_v32 = vpop.xlane.xlu0 %2449  ;;  %v5586_v57 = vsel %vm2541_vm6, %v2525_v13, 0.0 }
 0x412   :  { %3916 = vrcp.f32 %v2450_v32  ;;  %v2577_v60 = vsel %vm740_vm2, %v5586_v57, 0.0 }
 0x413   :  { %v5590_v6 = vpop.xlane.xlu1 %1413  ;;  %2578 = vadd.xlane.f32.xlu1 %v2577_v60 }
 0x415   :  { %v5593_v33 = vpop.xlane.xlu0 %1410 }
 0x417   :  { %v3909_v55 = vpop.eup %3908  ;;  %v2447_v51 = vpop.xlane.xlu1 %2446 }
 0x418   :  { %v3911_v17 = vpop.eup %3910  ;;  %3918 = vrcp.f32 %v2447_v51  ;;  %v2496_v20 = vmul.f32 %v3909_v55, %v5370_v29  ;;  %v2689_v29 = vld [vmem:[%s5884_s1 + $0x30] sm:$0xff] }
 0x419   :  { %v3913_v41 = vpop.eup %3912  ;;  %3920 = vrcp.f32 %v5513_v47  ;;  %v1926_v12 = vpop.xlane.xlu0 %1925  ;;  %3648 = vmatprep.subr.mxu0 %v2689_v29 }
 0x41a   :  { %3922 = vrcp.f32 %v5515_v48  ;;  %v2512_v53 = vadd.f32 %v2496_v20, %v1982_v15  ;;  %v2495_v63 = vmul.f32 %v3913_v41, %v5375_v40  ;;  %v1968_v48 = vmul.f32 %v3911_v17, %v5309_v36  ;;  %3649 = vmatpush3.msra.mxu0 %v2689_v29  ;;  %v2688_v40 = vld [vmem:[%s5884_s1 + $0x28] sm:$0xff] }
 0x41b   :  { %3924 = vrcp.f32 %v5517_v30  ;;  %v1923_v1 = vpop.xlane.xlu1 %1922  ;;  %v3915_v30 = vpop.eup %3914  ;;  %3650 = vmatprep.subr.mxu0 %v2688_v40 }
 0x41c   :  { %3926 = vrcp.f32 %v5519_v56  ;;  %v2528_v47 = vmul.f32 0.25, %v2512_v53  ;;  %v2511_v22 = vadd.f32 %v2495_v63, %v1981_v31  ;;  %3651 = vmatpush3.msra.mxu0 %v2688_v40 }
 0x41d   :  { %3928 = vrcp.f32 %v5525_v8  ;;  %v1932_v52 = vpop.xlane.xlu0 %1931  ;;  %v2687_v8 = vld [vmem:[%s5884_s1 + $0x20] sm:$0xff] }
 0x41e   :  { %3930 = vrcp.f32 %v5529_v34  ;;  %vm2544_vm7 = vcmp.gt.f32.partialorder %v2528_v47, 0.1  ;;  %v2527_v42 = vmul.f32 0.25, %v2511_v22  ;;  %v1984_v34 = vadd.f32 %v1968_v48, %v5507_v39  ;;  %3652 = vmatprep.subr.mxu0 %v2687_v8  ;;  %v5989_v48 = vld [vmem:[#allocation25_spill] sm:$0xff] }
 0x41f   :  { %v3917_v56 = vpop.eup %3916  ;;  %3932 = vrcp.f32 %v5537_v23  ;;  %v1929_v50 = vpop.xlane.xlu1 %1928  ;;  %v5617_v36 = vsel %vm2544_vm7, %v2528_v47, 0.0  ;;  %3653 = vmatpush3.msra.mxu0 %v2687_v8  ;;  %v5988_v47 = vld [vmem:[#allocation8_spill] sm:$0xff] }
 0x420   :  { %v2586_v54 = vsel %vm740_vm2, %v5617_v36, 0.0  ;;  %vm2543_vm8 = vcmp.gt.f32.partialorder %v2527_v42, 0.1  ;;  %v2498_v9 = vmul.f32 %v3917_v56, %v5390_v43  ;;  %3934 = vrcp.f32 %v5539_v2  ;;  %3654 = vmatprep.subr.mxu0 %v2686_v37 }
 0x421   :  { %2587 = vadd.xlane.f32.xlu0 %v2586_v54  ;;  %v5627_v23 = vpop.xlane.xlu0 %1943  ;;  %v5629_v19 = vsel %vm2543_vm8, %v2527_v42, 0.0  ;;  %3936 = vrcp.f32 %v5544_v24  ;;  %v1967_v43 = vmul.f32 %v3915_v30, %v5323_v45  ;;  %3655 = vmatpush3.msra.mxu0 %v2686_v37  ;;  %v2684_v24 = vld [vmem:[%s5884_s1 + $0x8] sm:$0xff]  ;;  %v5992_v54 = vld [vmem:[#allocation16_spill] sm:$0xff] }
 0x422   :  { %v2583_v39 = vsel %vm740_vm2, %v5629_v19, 0.0  ;;  %v2514_v18 = vadd.f32 %v2498_v9, %v1984_v34  ;;  %3938 = vrcp.f32 %v5547_v28  ;;  %3656 = vmatprep.subr.mxu0 %v2685_v27  ;;  %v2683_v28 = vld [vmem:[%s5884_s1] sm:$0xff]  ;;  %v5990_v30 = vld [vmem:[#allocation26_spill] sm:$0xff] }
 0x423   :  { %v5639_v2 = vpop.xlane.xlu1 %1937  ;;  %2584 = vadd.xlane.f32.xlu1 %v2583_v39  ;;  %3940 = vrcp.f32 %v1926_v12  ;;  %3657 = vmatpush3.msra.mxu0 %v2685_v27  ;;  %v1983_v3 = vadd.f32 %v1967_v43, %v5511_v38  ;;  %v5994_v39 = vld [vmem:[#allocation9_spill] sm:$0xff] }
 0x424   :  { %v2530_v61 = vmul.f32 0.25, %v2514_v18  ;;  %3942 = vrcp.f32 %v5561_v26  ;;  %3658 = vmatprep.subr.mxu0 %v2684_v24  ;;  %v5995_v43 = vld [vmem:[#allocation13_spill] sm:$0xff] }
 0x425   :  { %v3919_v62 = vpop.eup %3918  ;;  %v1941_v45 = vpop.xlane.xlu0 %1940  ;;  %3944 = vrcp.f32 %v1923_v1  ;;  %3659 = vmatpush3.msra.mxu0 %v2684_v24  ;;  %v5987_v1 = vld [vmem:[#allocation17_spill] sm:$0xff]  ;;  %v5996_v24 = vld [vmem:[#allocation28_spill] sm:$0xff] }
 0x426   :  { %v3921_v25 = vpop.eup %3920  ;;  %vm2546_vm9 = vcmp.gt.f32.partialorder %v2530_v61, 0.1  ;;  %v2497_v16 = vmul.f32 %v3919_v62, %v5405_v44  ;;  %3946 = vrcp.f32 %v1932_v52  ;;  %3660 = vmatprep.subr.mxu0 %v2683_v28 }
 0x427   :  { %v3923_v13 = vpop.eup %3922  ;;  %v1935_v46 = vpop.xlane.xlu1 %1934  ;;  %v5653_v7 = vsel %vm2546_vm9, %v2530_v61, 0.0  ;;  %3948 = vrcp.f32 %v5577_v59  ;;  %3661 = vmatpush3.msra.mxu0 %v2683_v28  ;;  %v910_v29 = vmul.f32 %v3921_v25, %v5987_v1 }
 0x428   :  { %v3925_v26 = vpop.eup %3924  ;;  %v2592_v32 = vsel %vm740_vm2, %v5653_v7, 0.0  ;;  %v2513_v60 = vadd.f32 %v2497_v16, %v1983_v3  ;;  %3950 = vrcp.f32 %v1929_v50  ;;  %v5991_v50 = vld [vmem:[#allocation18_spill] sm:$0xff]  ;;  %v5997_v16 = vld [vmem:[#allocation20_spill] sm:$0xff] }
 0x429   :  { %v3927_v35 = vpop.eup %3926  ;;  %2593 = vadd.xlane.f32.xlu0 %v2592_v32  ;;  %v2456_v38 = vpop.xlane.xlu0 %2455  ;;  %v909_v8 = vmul.f32 %v3923_v13, %v5991_v50 }
 0x42a   :  { %v5658_v44 = vpop.eup %3928  ;;  %3952 = vrcp.f32 %v2456_v38  ;;  %v2529_v21 = vmul.f32 0.25, %v2513_v60  ;;  %v911_v13 = vmul.f32 %v3927_v35, %v5997_v16 }
 0x42b   :  { %v5660_v10 = vpop.eup %3930  ;;  %3954 = vrcp.f32 %v5579_v5  ;;  %v2453_v55 = vpop.xlane.xlu1 %2452 }
 0x42c   :  { %v5663_v59 = vpop.eup %3932  ;;  %3956 = vrcp.f32 %v2453_v55  ;;  %vm2545_vm10 = vcmp.gt.f32.partialorder %v2529_v21, 0.1 }
 0x42d   :  { %3958 = vrcp.f32 %v5593_v33  ;;  %v2462_v51 = vpop.xlane.xlu0 %2461  ;;  %v5666_v17 = vsel %vm2545_vm10, %v2529_v21, 0.0  ;;  %v3935_v15 = vpop.eup %3934  ;;  %v5999_v21 = vld [vmem:[#allocation29_spill] sm:$0xff] }
 0x42e   :  { %3960 = vrcp.f32 %v2462_v51  ;;  %v2589_v20 = vsel %vm740_vm2, %v5666_v17, 0.0  ;;  %v3937_v41 = vpop.eup %3936  ;;  %v1440_v33 = vmul.f32 %v3935_v15, %v5329_v58 }
 0x42f   :  { %3962 = vrcp.f32 %v1941_v45  ;;  %v2459_v12 = vpop.xlane.xlu1 %2458  ;;  %2590 = vadd.xlane.f32.xlu1 %v2589_v20  ;;  %v3939_v5 = vpop.eup %3938  ;;  %v1439_v52 = vmul.f32 %v3937_v41, %v5989_v48 }
 0x430   :  { %3964 = vrcp.f32 %v2459_v12  ;;  %v3941_v11 = vpop.eup %3940  ;;  %v1442_v42 = vmul.f32 %v3939_v5, %v5990_v30  ;;  %v1456_v56 = vadd.f32 %v1440_v33, %v910_v29  ;;  %v6002_v29 = vld [vmem:[#allocation22_spill] sm:$0xff] }
 0x431   :  { %3966 = vrcp.f32 %v5590_v6  ;;  %v3943_v53 = vpop.eup %3942  ;;  %v1970_v22 = vmul.f32 %v3941_v11, %v5988_v47  ;;  %v1455_v45 = vadd.f32 %v1439_v52, %v909_v8  ;;  %v913_v47 = vmul.f32 %v5658_v44, %v6002_v29  ;;  %v6005_v8 = vld [vmem:[#allocation14_spill] sm:$0xff] }
 0x432   :  { %3968 = vrcp.f32 %v1935_v46  ;;  %v3945_v31 = vpop.eup %3944  ;;  %v1441_v27 = vmul.f32 %v3943_v53, %v5995_v43  ;;  %v5998_v46 = vld [vmem:[#allocation10_spill] sm:$0xff] }
 0x433   :  { %3970 = vrcp.f32 %v5627_v23  ;;  %v3947_v63 = vpop.eup %3946  ;;  %v5993_v23 = vld [vmem:[#allocation19_spill] sm:$0xff]  ;;  %v6000_v53 = vld [vmem:[#allocation30_spill] sm:$0xff] }
 0x434   :  { %3972 = vrcp.f32 %v5523_v14  ;;  %v5677_v40 = vpop.eup %3948  ;;  %v1969_v14 = vmul.f32 %v3945_v31, %v5992_v54  ;;  %v912_v37 = vmul.f32 %v3925_v26, %v5993_v23  ;;  %v1972_v18 = vmul.f32 %v3947_v63, %v5994_v39  ;;  %v6001_v63 = vld [vmem:[#allocation7_spill] sm:$0xff] }
 0x435   :  { %3974 = vrcp.f32 %v5639_v2  ;;  %v2471_v6 = vpop.xlane.xlu0 %2470  ;;  %v3951_v58 = vpop.eup %3950  ;;  %v1986_v2 = vadd.f32 %v1970_v22, %v1456_v56  ;;  %v1457_v41 = vadd.f32 %v1441_v27, %v911_v13  ;;  %v6004_v56 = vld [vmem:[#allocation24_spill] sm:$0xff]  ;;  %v6007_v27 = vld [vmem:[#allocation23_spill] sm:$0xff] }
 0x436   :  { %3976 = vrcp.f32 %v2471_v6  ;;  %v1458_v3 = vadd.f32 %v1442_v42, %v912_v37  ;;  %v1971_v32 = vmul.f32 %v3951_v58, %v5998_v46  ;;  %v1985_v38 = vadd.f32 %v1969_v14, %v1455_v45  ;;  %v6003_v6 = vld [vmem:[#allocation31_spill] sm:$0xff]  ;;  %v6006_v14 = vld [vmem:[#allocation6_spill] sm:$0xff] }
 0x437   :  { %v3953_v34 = vpop.eup %3952  ;;  %v2465_v9 = vpop.xlane.xlu1 %2464  ;;  %v915_v50 = vmul.f32 %v5663_v59, %v6004_v56  ;;  %v6008_v59 = vld [vmem:[#allocation15_spill] sm:$0xff] }
 0x438   :  { %v3955_v61 = vpop.eup %3954  ;;  %3978 = vrcp.f32 %v2465_v9  ;;  %v2500_v62 = vmul.f32 %v3953_v34, %v5996_v24  ;;  %v1988_v20 = vadd.f32 %v1972_v18, %v1458_v3  ;;  %v1987_v35 = vadd.f32 %v1971_v32, %v1457_v41  ;;  %v6010_v46 = vld [vmem:[#allocation11_spill] sm:$0xff]  ;;  %v6013_v41 = vld [vmem:[#allocation21_spill] sm:$0xff] }
 0x439   :  { %v3957_v28 = vpop.eup %3956  ;;  %v2474_v25 = vpop.xlane.xlu0 %2473  ;;  %v1443_v34 = vmul.f32 %v3955_v61, %v6006_v14 }
 0x43a   :  { %v3959_v60 = vpop.eup %3958  ;;  %3980 = vrcp.f32 %v2474_v25  ;;  %v2516_v26 = vadd.f32 %v2500_v62, %v1986_v2  ;;  %v2499_v55 = vmul.f32 %v3957_v28, %v5999_v21  ;;  %v916_v2 = vmul.f32 %v5660_v10, %v6007_v27  ;;  %v6009_v28 = vld [vmem:[#allocation27_spill] sm:$0xff]  ;;  %v6012_v21 = vld [vmem:[#allocation32_spill] sm:$0xff] }
 0x43b   :  { %v3961_v51 = vpop.eup %3960  ;;  %v2468_v15 = vpop.xlane.xlu1 %2467  ;;  %v1445_v1 = vmul.f32 %v3959_v60, %v6001_v63  ;;  %v1459_v13 = vadd.f32 %v1443_v34, %v913_v47  ;;  %v6011_v60 = vld [vmem:[#allocation5_spill] sm:$0xff] }
 0x43c   :  { %v3963_v12 = vpop.eup %3962  ;;  %3982 = vrcp.f32 %v2468_v15  ;;  %v2532_v5 = vmul.f32 0.25, %v2516_v26  ;;  %v2515_v11 = vadd.f32 %v2499_v55, %v1985_v38  ;;  %v2502_v33 = vmul.f32 %v3961_v51, %v6000_v53 }
 0x43d   :  { %v3965_v31 = vpop.eup %3964  ;;  %v1975_v54 = vmul.f32 %v3963_v12, %v6005_v8  ;;  %v1461_v43 = vadd.f32 %v1445_v1, %v915_v50  ;;  %v1444_v10 = vmul.f32 %v5677_v40, %v6011_v60  ;;  %v6017_v50 = vld [vmem:[#allocation35_spill] sm:$0xff] }
 0x43e   :  { %v3967_v22 = vpop.eup %3966  ;;  %vm2548_vm11 = vcmp.gt.f32.partialorder %v2532_v5, 0.1  ;;  %v2531_v48 = vmul.f32 0.25, %v2515_v11  ;;  %v2518_v52 = vadd.f32 %v2502_v33, %v1988_v20  ;;  %v2501_v30 = vmul.f32 %v3965_v31, %v6003_v6  ;;  %v6015_v31 = vld [vmem:[#allocation34_spill] sm:$0xff] }
 0x43f   :  { %v3969_v42 = vpop.eup %3968  ;;  %v5695_v58 = vsel %vm2548_vm11, %v2532_v5, 0.0  ;;  %v1446_v24 = vmul.f32 %v3967_v22, %v6008_v59  ;;  %v1991_v38 = vadd.f32 %v1975_v54, %v1461_v43  ;;  %v6014_v5 = vld [vmem:[#allocation12_spill] sm:$0xff] }
 0x440   :  { %v3971_v9 = vpop.eup %3970  ;;  %v2598_v44 = vsel %vm740_vm2, %v5695_v58, 0.0  ;;  %vm2547_vm12 = vcmp.gt.f32.partialorder %v2531_v48, 0.1  ;;  %v2534_v23 = vmul.f32 0.25, %v2518_v52  ;;  %v2517_v37 = vadd.f32 %v2501_v30, %v1987_v35 }
 0x441   :  { %v3973_v39 = vpop.eup %3972  ;;  %2599 = vadd.xlane.f32.xlu0 %v2598_v44  ;;  %v5703_v18 = vsel %vm2547_vm12, %v2531_v48, 0.0  ;;  %v1973_v25 = vmul.f32 %v3969_v42, %v6009_v28  ;;  %v1976_v32 = vmul.f32 %v3971_v9, %v6010_v46  ;;  %v1462_v20 = vadd.f32 %v1446_v24, %v916_v2  ;;  %v6016_v48 = vld [vmem:[#allocation33_spill] sm:$0xff]  ;;  %v2698_v2 = vld [vmem:[%s5884_s1 + $0x78] sm:$0xff]  ;;  %v2697_v24 = vld [vmem:[%s5884_s1 + $0x70] sm:$0xff] }
 0x442   :  { %v3975_v62 = vpop.eup %3974  ;;  %v2595_v61 = vsel %vm740_vm2, %v5703_v18, 0.0  ;;  %vm2550_vm13 = vcmp.gt.f32.partialorder %v2534_v23, 0.1  ;;  %v2533_v45 = vmul.f32 0.25, %v2517_v37  ;;  %v914_v12 = vmul.f32 %v3973_v39, %v6013_v41  ;;  %3674 = vmatprep.subr.mxu0 %v2698_v2  ;;  %3702 = vmatprep.subr.mxu1 %v2698_v2  ;;  %v2693_v28 = vld [vmem:[%s5884_s1 + $0x50] sm:$0xff] }
 0x443   :  { %v3977_v3 = vpop.eup %3976  ;;  %2596 = vadd.xlane.f32.xlu1 %v2595_v61  ;;  %v5711_v16 = vsel %vm2550_vm13, %v2534_v23, 0.0  ;;  %v1974_v11 = vmul.f32 %v3975_v62, %v6014_v5  ;;  %v1989_v33 = vadd.f32 %v1973_v25, %v1459_v13  ;;  %v1992_v22 = vadd.f32 %v1976_v32, %v1462_v20  ;;  %3710 = vmatpush3.msra.mxu1 %v2698_v2  ;;  %v2696_v62 = vld [vmem:[%s5884_s1 + $0x68] sm:$0xff]  ;;  %v2695_v61 = vld [vmem:[%s5884_s1 + $0x60] sm:$0xff] }
 0x444   :  { %v2604_v26 = vsel %vm740_vm2, %v5711_v16, 0.0  ;;  %vm2549_vm14 = vcmp.gt.f32.partialorder %v2533_v45, 0.1  ;;  %v2505_v55 = vmul.f32 %v3977_v3, %v6012_v21  ;;  %v1460_v1 = vadd.f32 %v1444_v10, %v914_v12  ;;  %3703 = vmatprep.subr.mxu1 %v2697_v24  ;;  %v2692_v25 = vld [vmem:[%s5884_s1 + $0x48] sm:$0xff]  ;;  %v2691_v3 = vld [vmem:[%s5884_s1 + $0x40] sm:$0xff] }
 0x445   :  { %v3979_v51 = vpop.eup %3978  ;;  %2605 = vadd.xlane.f32.xlu0 %v2604_v26  ;;  %v5719_v15 = vsel %vm2549_vm14, %v2533_v45, 0.0  ;;  %3711 = vmatpush3.msra.mxu1 %v2697_v24  ;;  %v2694_v45 = vld [vmem:[%s5884_s1 + $0x58] sm:$0xff]  ;;  %s4045_s1 = smov [#allocation2]  }
 0x446   :  { %v2601_v53 = vsel %vm740_vm2, %v5719_v15, 0.0  ;;  %v2521_v40 = vadd.f32 %v2505_v55, %v1991_v38  ;;  %v2503_v35 = vmul.f32 %v3979_v51, %v6015_v31  ;;  %v1990_v30 = vadd.f32 %v1974_v11, %v1460_v1  ;;  %3704 = vmatprep.subr.mxu1 %v2696_v62  ;;  %s2978_s23 = sshll.u32 %s4045_s1, 4  ;;  %s2979_s23 = int_to_ptr.vmem [resolvable:$true] %s2978_s23 }
 0x447   :  { %v3981_v63 = vpop.eup %3980  ;;  %2602 = vadd.xlane.f32.xlu1 %v2601_v53  ;;  %3712 = vmatpush3.msra.mxu1 %v2696_v62  ;;  %s4016_s24 = scalar_lea.vmem %s2979_s23, 2048  ;;  %p4021_p1 = scmp.lt.s32.totalorder %s2979_s23, %s2979_s23 }
 0x448   :  { %v2537_v29 = vmul.f32 0.25, %v2521_v40  ;;  %v2519_v47 = vadd.f32 %v2503_v35, %v1989_v33  ;;  %v2506_v52 = vmul.f32 %v3981_v63, %v6016_v48  ;;  %3705 = vmatprep.subr.mxu1 %v2695_v61  ;;  %p4017_p0 = scmp.ne.s32.totalorder %s2979_s23, %s4016_s24  ;;  %p4022_p2 = scmp.lt.s32.totalorder %s4016_s24, %s4016_s24 }
 0x449   :  { %v3983_v6 = vpop.eup %3982  ;;  %3713 = vmatpush3.msra.mxu1 %v2695_v61 }
 0x44a   :  { %vm2553_vm15 = vcmp.gt.f32.partialorder %v2537_v29, 0.1  ;;  %v2535_v42 = vmul.f32 0.25, %v2519_v47  ;;  %v2522_v56 = vadd.f32 %v2506_v52, %v1992_v22  ;;  %v2504_v8 = vmul.f32 %v3983_v6, %v6017_v50  ;;  %3706 = vmatprep.subr.mxu1 %v2694_v45  ;;  %p4023_p3 = por %p4022_p2, %p4021_p1 }
 0x44b   :  { %v5728_v54 = vsel %vm2553_vm15, %v2537_v29, 0.0  ;;  %3714 = vmatpush3.msra.mxu1 %v2694_v45 }
 0x44c   :  { %v2613_v14 = vsel %vm740_vm2, %v5728_v54, 0.0  ;;  %vm2551_vm1 = vcmp.gt.f32.partialorder %v2535_v42, 0.1  ;;  %v2538_v34 = vmul.f32 0.25, %v2522_v56  ;;  %v2520_v9 = vadd.f32 %v2504_v8, %v1990_v30  ;;  %3707 = vmatprep.subr.mxu1 %v2693_v28  ;;  %p4024_p4 = pnand %p4023_p3, %p4017_p0 }
 0x44d   :  { %2614 = vadd.xlane.f32.xlu0 %v2613_v14  ;;  %v5732_v44 = vsel %vm2551_vm1, %v2535_v42, 0.0  ;;  %3715 = vmatpush3.msra.mxu1 %v2693_v28 }
 0x44e   :  { %v2607_v23 = vsel %vm740_vm2, %v5732_v44, 0.0  ;;  %vm2554_vm3 = vcmp.gt.f32.partialorder %v2538_v34, 0.1  ;;  %v2536_v37 = vmul.f32 0.25, %v2520_v9  ;;  %3708 = vmatprep.subr.mxu1 %v2692_v25 }
 0x44f   :  { %2608 = vadd.xlane.f32.xlu1 %v2607_v23  ;;  %v5736_v39 = vsel %vm2554_vm3, %v2538_v34, 0.0  ;;  %3716 = vmatpush3.msra.mxu1 %v2692_v25 }
 0x450   :  { %v2616_v43 = vsel %vm740_vm2, %v5736_v39, 0.0  ;;  %vm2552_vm4 = vcmp.gt.f32.partialorder %v2536_v37, 0.1  ;;  %3709 = vmatprep.subr.mxu1 %v2691_v3 }
 0x451   :  { %2617 = vadd.xlane.f32.xlu0 %v2616_v43  ;;  %v5740_v27 = vsel %vm2552_vm4, %v2536_v37, 0.0  ;;  %3717 = vmatpush3.msra.mxu1 %v2691_v3 }
 0x452   :  { %v2610_v59 = vsel %vm740_vm2, %v5740_v27, 0.0 }
 0x453   :  { %2611 = vadd.xlane.f32.xlu1 %v2610_v59 }
 0x491   :  { %v2576_v13 = vpop.xlane.xlu0 %2575 }
 0x492   :  { %v2620_v46 = vadd.f32 1e-06, %v2576_v13 }
 0x493   :  { %v2573_v32 = vpop.xlane.xlu1 %2572 }
 0x494   :  { %3984 = vrcp.f32 %v2620_v46  ;;  %v2619_v60 = vadd.f32 1e-06, %v2573_v32 }
 0x496   :  { %3986 = vrcp.f32 %v2619_v60 }
 0x49a   :  { %v2582_v10 = vpop.xlane.xlu0 %2581 }
 0x49b   :  { %v2622_v26 = vadd.f32 1e-06, %v2582_v10 }
 0x49c   :  { %v2579_v38 = vpop.xlane.xlu1 %2578 }
 0x49d   :  { %3988 = vrcp.f32 %v2622_v26  ;;  %v2621_v21 = vadd.f32 1e-06, %v2579_v38 }
 0x49f   :  { %3990 = vrcp.f32 %v2621_v21 }
 0x4a1   :  { %v3985_v55 = vpop.eup %3984 }
 0x4a2   :  { %v2652_v51 = vmul.f32 %v3985_v55, %v5564_v49 }
 0x4a3   :  { %v3987_v20 = vpop.eup %3986 }
 0x4a4   :  { %2668 = vst.msk [vmem:[#allocation2 + $0x8] sm:$0xff] %vm740_vm2, %v2652_v51  ;;  %v2651_v41 = vmul.f32 %v3987_v20, %v5570_v0 }
 0x4a6   :  { %2667 = vst.msk [vmem:[#allocation2] sm:$0xff] %vm740_vm2, %v2651_v41  ;;  %3662 = vmatprep.mubr.msk.f32.mxu0 %vm740_vm2, %v2651_v41 }
 0x4a7   :  { %3663 = vmatmul.mubr.msk.f32.vlgmr.msra.gmra.mxu0 %vm740_vm2, %v2652_v51 }
 0x4a8   :  { %3675 = vmatpush3.msra.mxu0 %v2698_v2 }
 0x4a9   :  { %3676 = vmatprep.subr.mxu0 %v2697_v24 }
 0x4aa   :  { %v3989_v12 = vpop.eup %3988  ;;  %v2588_v5 = vpop.xlane.xlu0 %2587  ;;  %3677 = vmatpush3.msra.mxu0 %v2697_v24 }
 0x4ab   :  { %v2624_v11 = vadd.f32 1e-06, %v2588_v5  ;;  %v2654_v53 = vmul.f32 %v3989_v12, %v5581_v4  ;;  %3678 = vmatprep.subr.mxu0 %v2696_v62 }
 0x4ac   :  { %v3991_v49 = vpop.eup %3990  ;;  %v2585_v40 = vpop.xlane.xlu1 %2584  ;;  %3679 = vmatpush3.msra.mxu0 %v2696_v62 }
 0x4ad   :  { %3992 = vrcp.f32 %v2624_v11  ;;  %v2623_v0 = vadd.f32 1e-06, %v2585_v40  ;;  %v2653_v33 = vmul.f32 %v3991_v49, %v5586_v57  ;;  %2670 = vst.msk [vmem:[#allocation2 + $0x18] sm:$0xff] %vm740_vm2, %v2654_v53  ;;  %3680 = vmatprep.subr.mxu0 %v2695_v61 }
 0x4ae   :  { %3681 = vmatpush3.msra.mxu0 %v2695_v61 }
 0x4af   :  { %3994 = vrcp.f32 %v2623_v0  ;;  %2669 = vst.msk [vmem:[#allocation2 + $0x10] sm:$0xff] %vm740_vm2, %v2653_v33  ;;  %3665 = vmatprep.mubr.msk.f32.mxu0 %vm740_vm2, %v2653_v33  ;;  %3682 = vmatprep.subr.mxu0 %v2694_v45 }
 0x4b0   :  { %3666 = vmatmul.mubr.msk.f32.gmra.mxu0 %vm740_vm2, %v2654_v53 }
 0x4b1   :  { %3683 = vmatpush3.msra.mxu0 %v2694_v45 }
 0x4b2   :  { %v2594_v4 = vpop.xlane.xlu0 %2593  ;;  %3684 = vmatprep.subr.mxu0 %v2693_v28 }
 0x4b3   :  { %v2626_v31 = vadd.f32 1e-06, %v2594_v4  ;;  %3685 = vmatpush3.msra.mxu0 %v2693_v28 }
 0x4b4   :  { %3686 = vmatprep.subr.mxu0 %v2692_v25 }
 0x4b5   :  { %3996 = vrcp.f32 %v2626_v31  ;;  %3687 = vmatpush3.msra.mxu0 %v2692_v25 }
 0x4b6   :  { %3688 = vmatprep.subr.mxu0 %v2691_v3 }
 0x4b7   :  { %3689 = vmatpush3.msra.mxu0 %v2691_v3 }
 0x4b8   :  { %v2591_v57 = vpop.xlane.xlu1 %2590 }
 0x4b9   :  { %v2625_v35 = vadd.f32 1e-06, %v2591_v57 }
 0x4ba   :  { %v3993_v63 = vpop.eup %3992 }
 0x4bb   :  { %3998 = vrcp.f32 %v2625_v35  ;;  %v2656_v1 = vmul.f32 %v3993_v63, %v5617_v36 }
 0x4bc   :  { %v3995_v29 = vpop.eup %3994 }
 0x4bd   :  { %v2655_v47 = vmul.f32 %v3995_v29, %v5629_v19  ;;  %2672 = vst.msk [vmem:[#allocation2 + $0x28] sm:$0xff] %vm740_vm2, %v2656_v1 }
 0x4bf   :  { %2671 = vst.msk [vmem:[#allocation2 + $0x20] sm:$0xff] %vm740_vm2, %v2655_v47  ;;  %3668 = vmatprep.mubr.msk.f32.mxu0 %vm740_vm2, %v2655_v47 }
 0x4c0   :  { %3669 = vmatmul.mubr.msk.f32.gmra.mxu0 %vm740_vm2, %v2656_v1 }
 0x4c2   :  { %v3997_v22 = vpop.eup %3996 }
 0x4c3   :  { %v2658_v48 = vmul.f32 %v3997_v22, %v5653_v7 }
 0x4c5   :  { %2674 = vst.msk [vmem:[#allocation2 + $0x38] sm:$0xff] %vm740_vm2, %v2658_v48 }
 0x4c8   :  { %v3999_v52 = vpop.eup %3998 }
 0x4c9   :  { %v2657_v6 = vmul.f32 %v3999_v52, %v5666_v17 }
 0x4ca   :  { %v2600_v36 = vpop.xlane.xlu0 %2599 }
 0x4cb   :  { %v2628_v30 = vadd.f32 1e-06, %v2600_v36  ;;  %2673 = vst.msk [vmem:[#allocation2 + $0x30] sm:$0xff] %vm740_vm2, %v2657_v6  ;;  %3671 = vmatprep.mubr.msk.f32.mxu0 %vm740_vm2, %v2657_v6 }
 0x4cc   :  { %v2597_v19 = vpop.xlane.xlu1 %2596  ;;  %3672 = vmatmul.mubr.msk.f32.gmra.mxu0 %vm740_vm2, %v2658_v48 }
 0x4cd   :  { %4000 = vrcp.f32 %v2628_v30  ;;  %v2627_v42 = vadd.f32 1e-06, %v2597_v19 }
 0x4ce   :  { %v2606_v56 = vpop.xlane.xlu0 %2605 }
 0x4cf   :  { %4002 = vrcp.f32 %v2627_v42  ;;  %v2630_v50 = vadd.f32 1e-06, %v2606_v56 }
 0x4d0   :  { %v2603_v7 = vpop.xlane.xlu1 %2602 }
 0x4d1   :  { %4004 = vrcp.f32 %v2630_v50  ;;  %v2629_v8 = vadd.f32 1e-06, %v2603_v7 }
 0x4d3   :  { %4006 = vrcp.f32 %v2629_v8 }
 0x4d6   :  { %v2615_v14 = vpop.xlane.xlu0 %2614 }
 0x4d7   :  { %v2633_v17 = vadd.f32 1e-06, %v2615_v14 }
 0x4d8   :  { %v2609_v34 = vpop.xlane.xlu1 %2608 }
 0x4d9   :  { %4008 = vrcp.f32 %v2633_v17  ;;  %v2631_v9 = vadd.f32 1e-06, %v2609_v34 }
 0x4da   :  { %v4001_v23 = vpop.eup %4000  ;;  %v2618_v37 = vpop.xlane.xlu0 %2617 }
 0x4db   :  { %v2660_v43 = vmul.f32 %v4001_v23, %v5695_v58  ;;  %4010 = vrcp.f32 %v2631_v9  ;;  %v2634_v2 = vadd.f32 1e-06, %v2618_v37 }
 0x4dc   :  { %v4003_v59 = vpop.eup %4002  ;;  %v2612_v24 = vpop.xlane.xlu1 %2611 }
 0x4dd   :  { %2676 = vst.msk [vmem:[#allocation2 + $0x48] sm:$0xff] %vm740_vm2, %v2660_v43  ;;  %4012 = vrcp.f32 %v2634_v2  ;;  %v2632_v62 = vadd.f32 1e-06, %v2612_v24  ;;  %v2659_v61 = vmul.f32 %v4003_v59, %v5703_v18 }
 0x4de   :  { %v4005_v45 = vpop.eup %4004 }
 0x4df   :  { %4014 = vrcp.f32 %v2632_v62  ;;  %2675 = vst.msk [vmem:[#allocation2 + $0x40] sm:$0xff] %vm740_vm2, %v2659_v61  ;;  %3690 = vmatprep.mubr.msk.f32.mxu0 %vm740_vm2, %v2659_v61  ;;  %v2662_v28 = vmul.f32 %v4005_v45, %v5711_v16 }
 0x4e0   :  { %v4007_v25 = vpop.eup %4006  ;;  %3691 = vmatmul.mubr.msk.f32.vlgmr.msra.gmra.mxu0 %vm740_vm2, %v2660_v43 }
 0x4e1   :  { %v2661_v58 = vmul.f32 %v4007_v25, %v5719_v15  ;;  %2678 = vst.msk [vmem:[#allocation2 + $0x58] sm:$0xff] %vm740_vm2, %v2662_v28 }
 0x4e3   :  { %2677 = vst.msk [vmem:[#allocation2 + $0x50] sm:$0xff] %vm740_vm2, %v2661_v58  ;;  %3693 = vmatprep.mubr.msk.f32.mxu0 %vm740_vm2, %v2661_v58 }
 0x4e4   :  { %3694 = vmatmul.mubr.msk.f32.gmra.mxu0 %vm740_vm2, %v2662_v28 }
 0x4e6   :  { %v4009_v18 = vpop.eup %4008 }
 0x4e7   :  { %v2665_v3 = vmul.f32 %v4009_v18, %v5728_v54 }
 0x4e8   :  { %v4011_v13 = vpop.eup %4010 }
 0x4e9   :  { %2681 = vst.msk [vmem:[#allocation2 + $0x70] sm:$0xff] %vm740_vm2, %v2665_v3  ;;  %3699 = vmatprep.mubr.msk.f32.mxu1 %vm740_vm2, %v2665_v3  ;;  %v2663_v16 = vmul.f32 %v4011_v13, %v5732_v44 }
 0x4ea   :  { %v4013_v46 = vpop.eup %4012 }
 0x4eb   :  { %v2666_v15 = vmul.f32 %v4013_v46, %v5736_v39  ;;  %2679 = vst.msk [vmem:[#allocation2 + $0x60] sm:$0xff] %vm740_vm2, %v2663_v16  ;;  %3696 = vmatprep.mubr.msk.f32.mxu0 %vm740_vm2, %v2663_v16 }
 0x4ec   :  { %v4015_v32 = vpop.eup %4014 }
 0x4ed   :  { %2682 = vst.msk [vmem:[#allocation2 + $0x78] sm:$0xff] %vm740_vm2, %v2666_v15  ;;  %3700 = vmatmul.mubr.msk.f32.vlgmr.msra.gmra.mxu1 %vm740_vm2, %v2666_v15  ;;  %v2664_v54 = vmul.f32 %v4015_v32, %v5740_v27 }
 0x4ef   :  { %2680 = vst.msk [vmem:[#allocation2 + $0x68] sm:$0xff] %vm740_vm2, %v2664_v54  ;;  %3697 = vmatmul.mubr.msk.f32.gmra.mxu0 %vm740_vm2, %v2664_v54 }
 0x4f0   :  { %4027 = shalt.err (!%p4024_p4)
}
 0x4f1   :  { %s4046_s25 = smov 128   ;;  %s4047_s26 = smov 8  }
 0x4f2   :  { %2984 = dma.vmem_to_hbm [thread:$0]  %s2979_s23, 2048, %s5887_s4, [#allocation3], %s4046_s25, %s4046_s25, %s4047_s26  }
 0x567   :  { %v3664_v44 = vpop.f32.mrf.mxu0 }
 0x568   :  { %2958 = vst.msk [vmem:[%s5888_s5 + $0x8] sm:$0xff] %vm63_vm0, %v3664_v44 }
 0x569   :  { %v2789_v39 = vpop.f32.mrf.mxu0 }
 0x56a   :  { %2957 = vst.msk [vmem:[%s5888_s5] sm:$0xff] %vm63_vm0, %v2789_v39 }
 0x570   :  { %v3667_v27 = vpop.f32.mrf.mxu0 }
 0x571   :  { %2960 = vst.msk [vmem:[%s5888_s5 + $0x18] sm:$0xff] %vm63_vm0, %v3667_v27 }
 0x572   :  { %v2799_v60 = vpop.f32.mrf.mxu0 }
 0x573   :  { %2959 = vst.msk [vmem:[%s5888_s5 + $0x10] sm:$0xff] %vm63_vm0, %v2799_v60 }
 0x580   :  { %v3670_v10 = vpop.f32.mrf.mxu0 }
 0x581   :  { %2962 = vst.msk [vmem:[%s5888_s5 + $0x28] sm:$0xff] %vm63_vm0, %v3670_v10 }
 0x582   :  { %v2809_v26 = vpop.f32.mrf.mxu0 }
 0x583   :  { %2961 = vst.msk [vmem:[%s5888_s5 + $0x20] sm:$0xff] %vm63_vm0, %v2809_v26 }
 0x58c   :  { %v3673_v38 = vpop.f32.mrf.mxu0 }
 0x58d   :  { %2964 = vst.msk [vmem:[%s5888_s5 + $0x38] sm:$0xff] %vm63_vm0, %v3673_v38 }
 0x58e   :  { %v2819_v21 = vpop.f32.mrf.mxu0 }
 0x58f   :  { %2963 = vst.msk [vmem:[%s5888_s5 + $0x30] sm:$0xff] %vm63_vm0, %v2819_v21 }
 0x5a0   :  { %v3692_v55 = vpop.f32.mrf.mxu0 }
 0x5a1   :  { %2966 = vst.msk [vmem:[%s5888_s5 + $0x48] sm:$0xff] %vm63_vm0, %v3692_v55 }
 0x5a2   :  { %v2918_v51 = vpop.f32.mrf.mxu0 }
 0x5a3   :  { %2965 = vst.msk [vmem:[%s5888_s5 + $0x40] sm:$0xff] %vm63_vm0, %v2918_v51 }
 0x5a4   :  { %v3695_v20 = vpop.f32.mrf.mxu0 }
 0x5a5   :  { %2968 = vst.msk [vmem:[%s5888_s5 + $0x58] sm:$0xff] %vm63_vm0, %v3695_v20 }
 0x5a6   :  { %v2928_v41 = vpop.f32.mrf.mxu0 }
 0x5a7   :  { %2967 = vst.msk [vmem:[%s5888_s5 + $0x50] sm:$0xff] %vm63_vm0, %v2928_v41 }
 0x5ad   :  { %v3701_v12 = vpop.f32.mrf.mxu1 }
 0x5ae   :  { %2972 = vst.msk [vmem:[%s5888_s5 + $0x78] sm:$0xff] %vm63_vm0, %v3701_v12 }
 0x5af   :  { %v3698_v5 = vpop.f32.mrf.mxu0  ;;  %v2948_v11 = vpop.f32.mrf.mxu1 }
 0x5b0   :  { %2970 = vst.msk [vmem:[%s5888_s5 + $0x68] sm:$0xff] %vm63_vm0, %v3698_v5  ;;  %2971 = vst.msk [vmem:[%s5888_s5 + $0x70] sm:$0xff] %vm63_vm0, %v2948_v11 }
 0x5b1   :  { %v2938_v53 = vpop.f32.mrf.mxu0 }
 0x5b2   :  { %2969 = vst.msk [vmem:[%s5888_s5 + $0x60] sm:$0xff] %vm63_vm0, %v2938_v53 }
 0x5b3   :  { %4036 = dma.done.wait [#allocation3], 2048  }
 0x5b4   :  { %4037 = vsyncadd [#allocation3], 4294965248 }
 0x5b5   :  { %2992 = vsyncpa [#allocation3], 1 }

</bundles_post_ra>
